<compile_context>
chip_gen: v7x
topology: tpu7x:2x2x1
jax: 0.10.0
libtpu: 0.0.40
codegen_flags: <defaults>
</compile_context>

<pallas_src>
import numpy as np
import jax
import jax.numpy as jnp
from jax.experimental import pallas as pl
from jax.experimental.pallas import tpu as pltpu

NEG_SLOPE = 0.01     # nn.LeakyReLU default
GN_GROUPS = 8
GN_EPS = 1e-5


# --------------------------------------------------------------------------- #
# host-side (numpy) constants                                                  #
# --------------------------------------------------------------------------- #
def _conv_masks(oh, ow, nb):
    """(9, 1, nb*oh*ow) validity masks for a 3x3 / stride-1 / zero-pad-1 conv on
    a lane axis packing `nb` samples of oh*ow row-major pixels each.  Border
    masks also zero every lane a circular roll wrapped across a sample/image
    boundary, so pltpu.roll never leaks pixels between rows or samples."""
    p = oh * ow
    q = np.arange(nb * p)
    row = (q % p) // ow
    col = q % ow
    masks = np.ones((9, 1, nb * p), dtype=np.float32)
    for dy in range(3):
        for dx in range(3):
            m = np.ones(nb * p, dtype=bool)
            if dy == 0:
                m &= row >= 1
            if dy == 2:
                m &= row <= oh - 2
            if dx == 0:
                m &= col >= 1
            if dx == 2:
                m &= col <= ow - 2
            masks[dy * 3 + dx, 0] = m.astype(np.float32)
    return masks


def _group_avg_matrix(c, groups):
    """(C, C) matrix averaging channels within each GroupNorm group."""
    gc = c // groups
    a = np.zeros((c, c), dtype=np.float32)
    for g in range(groups):
        a[g * gc:(g + 1) * gc, g * gc:(g + 1) * gc] = 1.0 / gc
    return a


def _seg_matrices(p, nb):
    """S (nb*p, nb_pad): lane-segment (per-sample) summation matrix; S.T
    broadcasts a (C, nb_pad) per-sample vector back onto the packed lane axis.
    Padded to >=8 columns so every matmul dim stays tile-friendly; the padded
    columns are zero and cancel exactly."""
    nb_pad = int(np.ceil(nb / 8)) * 8
    s = np.zeros((nb * p, nb_pad), dtype=np.float32)
    for b in range(nb):
        s[b * p:(b + 1) * p, b] = 1.0
    return s, np.ascontiguousarray(s.T)


def _pick_samples_per_step(n, p):
    """Pack enough samples on the lane axis to make blocks >=128 lanes wide."""
    if p % 128 == 0 or n == 1:
        return 1
    want = min(n, -(-128 // p))                       # ceil(128 / p), capped at n
    divisors = [c for c in range(want, 0, -1) if n % c == 0]
    lane_dense = [c for c in divisors if (c * p) % 128 == 0]
    return (lane_dense or divisors or [1])[0]


# --------------------------------------------------------------------------- #
# kernel                                                                       #
# --------------------------------------------------------------------------- #
def _make_resblock_kernel(cin, cout, oh, ow, nb, stride, has_sc,
                          use_bf16, bf16_taps, mask_full):
    p = oh * ow
    L = nb * p
    cdt = jnp.bfloat16 if use_bf16 else jnp.float32                    # MXU operand dtype
    tdt = jnp.bfloat16 if (use_bf16 and bf16_taps) else jnp.float32    # tap/cols dtype

    def kernel(*refs):
        it = iter(refs)
        agg_ref = next(it)
        w1_ref = next(it)
        w2_ref = next(it)
        vecs_ref = next(it)
        masks_ref = next(it)
        s_ref = next(it) if nb > 1 else None
        st_ref = next(it) if nb > 1 else None
        wsc_ref = next(it) if has_sc else None
        xin_ref = next(it)      # stride==1: x (Cin,L); stride==2: im2col (9Cin,L)
        out_ref = next(it)

        agg = agg_ref[...]                                      # (Cout, Cout) f32
        msk = [None if mask_full[t] else masks_ref[t] for t in range(9)]

        def vec(k):                                             # (Cout, 1) f32
            return vecs_ref[:, k:k + 1]

        def lrelu(z):
            return jnp.where(z > 0, z, NEG_SLOPE * z)

        def rsqrt1(a):                                          # rsqrt + 1 Newton step
            r = jax.lax.rsqrt(a)
            return r * (1.5 - 0.5 * a * r * r)

        def seg_sum(y):                                         # (C, L) -> (C, nb_pad)
            if nb == 1:
                return jnp.sum(y, axis=1, keepdims=True)        # lane reduce (XLU)
            return jnp.dot(y, s_ref[...], preferred_element_type=jnp.float32)

        def seg_bcast(v):                                       # (C, nb_pad) -> (C, L)
            if nb == 1:
                return v                                        # (C,1) lane-broadcasts
            return jnp.dot(v, st_ref[...], preferred_element_type=jnp.float32)

        def gn(y, gamma, beta):
            # reduce-then-group: per-channel lane(-segment) sums, tiny group combine.
            mu = jnp.dot(agg, seg_sum(y),
                         preferred_element_type=jnp.float32) * (1.0 / p)
            mu_f = seg_bcast(mu)
            d = y - mu_f
            var = jnp.dot(agg, seg_sum(d * d),
                          preferred_element_type=jnp.float32) * (1.0 / p)
            inv = rsqrt1(var + GN_EPS)
            return d * seg_bcast(inv * gamma) + beta

        def conv3x3(a, wmat):
            # a: (C, L) activation at output resolution; wmat: (Cout, 9C) in cdt.
            a = a.astype(tdt)
            taps = []
            for dy in range(3):
                for dx in range(3):
                    t = dy * 3 + dx
                    off = (dy - 1) * ow + (dx - 1)
                    v = a if off == 0 else pltpu.roll(a, (-off) % L, axis=1)
                    if msk[t] is not None:          # border masks also kill roll wrap
                        v = v * msk[t]
                    taps.append(v)
            cols = jnp.concatenate(taps, axis=0)                # (9C, L)
            return jnp.dot(wmat, cols.astype(cdt),
                           preferred_element_type=jnp.float32)

        # ---- residual path: conv1 (+bias) -> GN -> LeakyReLU ------------------
        if stride == 1:
            x = xin_ref[...]                                    # (Cin, L) f32
            y1 = conv3x3(x, w1_ref[...]) + vec(0)
        else:
            p1 = xin_ref[...]                                   # (9Cin, L) f32 im2col
            p1c = p1 if cdt == jnp.float32 else p1.astype(cdt)
            y1 = jnp.dot(w1_ref[...], p1c,
                         preferred_element_type=jnp.float32) + vec(0)
        a1 = lrelu(gn(y1, vec(1), vec(2)))

        # ---- conv2 (+bias) -> GN ----------------------------------------------
        res = gn(conv3x3(a1, w2_ref[...]) + vec(3), vec(4), vec(5))

        # ---- skip path ----------------------------------------------------------
        if stride == 1:
            if has_sc:
                sc = jnp.dot(wsc_ref[...], x.astype(cdt),
                             preferred_element_type=jnp.float32) + vec(6)
                skip = gn(sc, vec(7), vec(8))
            else:
                skip = x
        else:
            # bilinear 0.5x skip == exact 2x2 average pooling (even H, W); the 4
            # contributing full-res pixel sets are exactly im2col taps
            # (dy,dx) in {(1,1),(1,2),(2,1),(2,2)}, which tile the image once.
            if has_sc:
                # GN's per-channel affine commutes with pooling: take full-res
                # statistics over the four tap convs, apply them to the pooled
                # 1x1-conv output.  No extra HBM streams needed.
                wsc = wsc_ref[...]
                sc_t = [jnp.dot(wsc, p1c[t * cin:(t + 1) * cin, :],
                                preferred_element_type=jnp.float32) + vec(6)
                        for t in (4, 5, 7, 8)]
                s1 = (seg_sum(sc_t[0]) + seg_sum(sc_t[1])
                      + seg_sum(sc_t[2]) + seg_sum(sc_t[3]))
                mu = jnp.dot(agg, s1,
                             preferred_element_type=jnp.float32) * (1.0 / (4 * p))
                mu_f = seg_bcast(mu)
                d0, d1 = sc_t[0] - mu_f, sc_t[1] - mu_f
                d2, d3 = sc_t[2] - mu_f, sc_t[3] - mu_f
                s2 = (seg_sum(d0 * d0) + seg_sum(d1 * d1)
                      + seg_sum(d2 * d2) + seg_sum(d3 * d3))
                var = jnp.dot(agg, s2,
                              preferred_element_type=jnp.float32) * (1.0 / (4 * p))
                inv = rsqrt1(var + GN_EPS)
                sc_pool = (sc_t[0] + sc_t[1] + sc_t[2] + sc_t[3]) * 0.25
                skip = (sc_pool - mu_f) * seg_bcast(inv * vec(7)) + vec(8)
            else:
                skip = (p1[4 * cin:5 * cin, :] + p1[5 * cin:6 * cin, :]
                        + p1[7 * cin:8 * cin, :] + p1[8 * cin:9 * cin, :]) * 0.25

        out_ref[...] = lrelu(skip + res).astype(out_ref.dtype)

    return kernel


# --------------------------------------------------------------------------- #
# wrapper                                                                      #
# --------------------------------------------------------------------------- #
def resblock_forward(x, params, *, stride, use_bf16=False, bf16_taps=None,
                     samples_per_step=None):
    """ResBlock forward.  x: (N, Cin, H, W) f32 -> (N, Cout, OH, OW) f32.

    use_bf16:  bf16 MXU operands, f32 accumulation (fast path on v5e/v6e/v7x).
    bf16_taps: also build tap/column buffers in bf16 (v6e/v7x bf16 VALU);
               pass False on v5e.  Defaults to use_bf16.
    """
    n, cin, h, w = x.shape
    w1 = params["w1"]
    cout = w1.shape[0]
    has_sc = (cin != cout)
    assert cout % GN_GROUPS == 0
    if stride == 1:
        oh, ow = h, w
    else:
        assert stride == 2 and h % 2 == 0 and w % 2 == 0
        oh, ow = h // 2, w // 2
    p = oh * ow
    if bf16_taps is None:
        bf16_taps = use_bf16
    cdt = jnp.bfloat16 if use_bf16 else jnp.float32
    tdt = jnp.bfloat16 if (use_bf16 and bf16_taps) else jnp.float32

    nb = (samples_per_step if samples_per_step is not None
          else _pick_samples_per_step(n, p))
    assert n % nb == 0
    L = nb * p

    # ---- grid-invariant operands (cast once here, never per grid step) -------
    agg = jnp.asarray(_group_avg_matrix(cout, GN_GROUPS))               # (Cout,Cout)
    # torch conv weight (O, I, 3, 3) -> (O, 9*I); column index = (dy*3+dx)*I + i
    w1m = jnp.transpose(w1, (0, 2, 3, 1)).reshape(cout, 9 * cin).astype(cdt)
    w2m = jnp.transpose(params["w2"], (0, 2, 3, 1)).reshape(cout, 9 * cout).astype(cdt)
    vec_names = ["b1", "g1", "be1", "b2", "g2", "be2"]
    if has_sc:
        vec_names += ["bsc", "gsc", "besc"]
    vecs = jnp.stack([params[k] for k in vec_names], axis=1)            # (Cout, NV) f32
    masks_np = _conv_masks(oh, ow, nb)
    mask_full = tuple(bool(masks_np[t].all()) for t in range(9))
    masks = jnp.asarray(masks_np).astype(tdt)

    const_in = [agg, w1m, w2m, vecs, masks]
    const_specs = [
        pl.BlockSpec((cout, cout), lambda b: (0, 0)),
        pl.BlockSpec((cout, 9 * cin), lambda b: (0, 0)),
        pl.BlockSpec((cout, 9 * cout), lambda b: (0, 0)),
        pl.BlockSpec((cout, vecs.shape[1]), lambda b: (0, 0)),
        pl.BlockSpec((9, 1, L), lambda b: (0, 0, 0)),
    ]
    if nb > 1:
        s_np, st_np = _seg_matrices(p, nb)
        const_in += [jnp.asarray(s_np), jnp.asarray(st_np)]
        const_specs += [pl.BlockSpec(s_np.shape, lambda b: (0, 0)),
                        pl.BlockSpec(st_np.shape, lambda b: (0, 0))]
    if has_sc:
        const_in.append(params["wsc"].reshape(cout, cin).astype(cdt))
        const_specs.append(pl.BlockSpec((cout, cin), lambda b: (0, 0)))
    # NOTE: constants are identical on every grid step; pl.Buffered(1) on their
    # specs would halve their VMEM residency (matters on v7x at large C), but
    # total here is <1 MiB so default pipelining is kept.

    # ---- per-sample operand: one lane-packed stream (pure layout plumbing) ---
    if stride == 1:
        # (N,Cin,H,W) -> (Cin, N*HW): channels on sublanes, samples on lanes.
        xin = jnp.transpose(x.reshape(n, cin, p), (1, 0, 2)).reshape(cin, n * p)
        samp_spec = pl.BlockSpec((cin, L), lambda b: (0, b))
    else:
        # im2col for the strided conv1 (tap-major rows, matching w1m columns).
        # Taps (1,1),(1,2),(2,1),(2,2) also provide the 2x2-avg-pool skip and
        # the full-res shortcut GN stats, so this is the ONLY per-sample stream.
        xpad = jnp.pad(x, ((0, 0), (0, 0), (1, 1), (1, 1)))
        taps = [xpad[:, :, dy:dy + 2 * oh:2, dx:dx + 2 * ow:2]
                for dy in range(3) for dx in range(3)]
        p1 = jnp.stack(taps, axis=1).reshape(n, 9 * cin, p)
        xin = jnp.transpose(p1, (1, 0, 2)).reshape(9 * cin, n * p)
        samp_spec = pl.BlockSpec((9 * cin, L), lambda b: (0, b))

    kernel = _make_resblock_kernel(cin, cout, oh, ow, nb, stride, has_sc,
                                   use_bf16, bf16_taps, mask_full)
    out_packed = pl.pallas_call(
        kernel,
        out_shape=jax.ShapeDtypeStruct((cout, n * p), jnp.float32),
        grid=(n // nb,),
        in_specs=const_specs + [samp_spec],
        out_specs=pl.BlockSpec((cout, L), lambda b: (0, b)),
        compiler_params=pltpu.CompilerParams(
            dimension_semantics=("parallel",),
            vmem_limit_bytes=32 * 1024 * 1024),
    )(*const_in, xin)

    # (Cout, N*P) -> NCHW
    return jnp.transpose(out_packed.reshape(cout, n, p),
                         (1, 0, 2)).reshape(n, cout, oh, ow)


# --------------------------------------------------------------------------- #
# pure-JAX reference (matches the PyTorch module)                              #
# --------------------------------------------------------------------------- #
def resblock_reference(x, params, *, stride):
    cout = params["w1"].shape[0]
    cin = x.shape[1]

    def conv(z, wt, b, s, pad):
        y = jax.lax.conv_general_dilated(
            z, wt, window_strides=(s, s), padding=((pad, pad), (pad, pad)),
            dimension_numbers=("NCHW", "OIHW", "NCHW"),
            precision=jax.lax.Precision.HIGHEST)
        return y + b[None, :, None, None]

    def gn(y, gamma, beta):
        nb_, c, hh, ww = y.shape
        yg = y.reshape(nb_, GN_GROUPS, c // GN_GROUPS, hh, ww)
        mu = yg.mean(axis=(2, 3, 4), keepdims=True)
        var = ((yg - mu) ** 2).mean(axis=(2, 3, 4), keepdims=True)
        yg = (yg - mu) / jnp.sqrt(var + GN_EPS)
        return (yg.reshape(nb_, c, hh, ww) * gamma[None, :, None, None]
                + beta[None, :, None, None])

    def lrelu(z):
        return jnp.where(z > 0, z, NEG_SLOPE * z)

    r = lrelu(gn(conv(x, params["w1"], params["b1"], stride, 1),
                 params["g1"], params["be1"]))
    r = gn(conv(r, params["w2"], params["b2"], 1, 1), params["g2"], params["be2"])
    xs = x
    if cin != cout:
        xs = gn(conv(x, params["wsc"], params["bsc"], 1, 0),
                params["gsc"], params["besc"])
    if stride != 1:
        nb_, c, hh, ww = xs.shape
        # F.interpolate(scale=0.5, bilinear, align_corners=False) == 2x2 avg pool
        xs = xs.reshape(nb_, c, hh // 2, 2, ww // 2, 2).mean(axis=(3, 5))
    return lrelu(xs + r)


def _make_params(key, cin, cout):
    ks = jax.random.split(key, 12)
    prm = {
        "w1": jax.random.normal(ks[0], (cout, cin, 3, 3), jnp.float32) / np.sqrt(9 * cin),
        "b1": 0.1 * jax.random.normal(ks[1], (cout,), jnp.float32),
        "g1": 1.0 + 0.1 * jax.random.normal(ks[2], (cout,), jnp.float32),
        "be1": 0.1 * jax.random.normal(ks[3], (cout,), jnp.float32),
        "w2": jax.random.normal(ks[4], (cout, cout, 3, 3), jnp.float32) / np.sqrt(9 * cout),
        "b2": 0.1 * jax.random.normal(ks[5], (cout,), jnp.float32),
        "g2": 1.0 + 0.1 * jax.random.normal(ks[6], (cout,), jnp.float32),
        "be2": 0.1 * jax.random.normal(ks[7], (cout,), jnp.float32),
    }
    if cin != cout:
        prm.update({
            "wsc": jax.random.normal(ks[8], (cout, cin, 1, 1), jnp.float32) / np.sqrt(cin),
            "bsc": 0.1 * jax.random.normal(ks[9], (cout,), jnp.float32),
            "gsc": 1.0 + 0.1 * jax.random.normal(ks[10], (cout,), jnp.float32),
            "besc": 0.1 * jax.random.normal(ks[11], (cout,), jnp.float32),
        })
    return prm


if __name__ == "__main__":
    key = jax.random.PRNGKey(0)
    kx1, kx2, kx3, kp1, kp2, kp3 = jax.random.split(key, 6)

    fwd = jax.jit(resblock_forward,
                  static_argnames=("stride", "use_bf16", "bf16_taps",
                                   "samples_per_step"))
    ref = jax.jit(resblock_reference, static_argnames=("stride",))

    N, H, W = 2, 16, 16

    # A: Cin == Cout, stride 1 (identity skip).
    params_a = _make_params(kp1, 16, 16)
    xa = jax.random.normal(kx1, (N, 16, H, W), jnp.float32)
    out_a = jax.block_until_ready(fwd(xa, params_a, stride=1))
    ref_a = jax.block_until_ready(ref(xa, params_a, stride=1))
    assert out_a.shape == (N, 16, H, W)
    np.testing.assert_allclose(np.asarray(out_a), np.asarray(ref_a),
                               rtol=1e-3, atol=1e-3)

    # B: Cin != Cout, stride 2 (conv1x1+GN shortcut, bilinear 0.5x skip).
    #    P=64, so two samples are packed per grid step -> 128-lane blocks.
    params_b = _make_params(kp2, 8, 16)
    xb = jax.random.normal(kx2, (N, 8, H, W), jnp.float32)
    out_b = jax.block_until_ready(fwd(xb, params_b, stride=2))
    ref_b = jax.block_until_ready(ref(xb, params_b, stride=2))
    assert out_b.shape == (N, 16, H // 2, W // 2)
    np.testing.assert_allclose(np.asarray(out_b), np.asarray(ref_b),
                               rtol=1e-3, atol=1e-3)

    # C: Cin == Cout, stride 2 (identity skip via in-kernel 2x2 avg pooling).
    params_c = _make_params(kp3, 16, 16)
    xc = jax.random.normal(kx3, (N, 16, H, W), jnp.float32)
    out_c = jax.block_until_ready(fwd(xc, params_c, stride=2))
    ref_c = jax.block_until_ready(ref(xc, params_c, stride=2))
    np.testing.assert_allclose(np.asarray(out_c), np.asarray(ref_c),
                               rtol=1e-3, atol=1e-3)

    # D: Cin != Cout, stride 1 (conv1x1+GN shortcut, no pooling).
    out_d = jax.block_until_ready(fwd(xb, params_b, stride=1))
    ref_d = jax.block_until_ready(ref(xb, params_b, stride=1))
    np.testing.assert_allclose(np.asarray(out_d), np.asarray(ref_d),
                               rtol=1e-3, atol=1e-3)

    # B with bf16 MXU operands + bf16 taps (v6e/v7x fast path; on v5e use
    # use_bf16=True, bf16_taps=False).
    out_b16 = jax.block_until_ready(fwd(xb, params_b, stride=2, use_bf16=True))
    np.testing.assert_allclose(np.asarray(out_b16), np.asarray(ref_b),
                               rtol=6e-2, atol=6e-2)

    print("KERNEL_OK")
</pallas_src>

<mosaic_0001>
module attributes {stable_mosaic.version = 11 : i64} {
  func.func @kernel(%arg0: i32, %arg1: memref<16x16xf32, #tpu.memory_space<vmem>>, %arg2: memref<16x144xf32, #tpu.memory_space<vmem>>, %arg3: memref<16x144xf32, #tpu.memory_space<vmem>>, %arg4: memref<16x6xf32, #tpu.memory_space<vmem>>, %arg5: memref<9x1x256xf32, #tpu.memory_space<vmem>>, %arg6: memref<16x256xf32, #tpu.memory_space<vmem>>, %arg7: memref<16x256xf32, #tpu.memory_space<vmem>>) attributes {dimension_semantics = [#tpu.dimension_semantics<parallel>], iteration_bounds = array<i64: 2>, scalar_prefetch = 0 : i64, scratch_operands = 0 : i64, tpu.core_type = #tpu.core_type<tc>, window_params = [{pipeline_mode = #tpu.pipeline_mode<synchronous>, transform_indices = @transform_0, window_bounds = array<i64: 16, 16>}, {pipeline_mode = #tpu.pipeline_mode<synchronous>, transform_indices = @transform_1, window_bounds = array<i64: 16, 144>}, {pipeline_mode = #tpu.pipeline_mode<synchronous>, transform_indices = @transform_2, window_bounds = array<i64: 16, 144>}, {pipeline_mode = #tpu.pipeline_mode<synchronous>, transform_indices = @transform_3, window_bounds = array<i64: 16, 6>}, {pipeline_mode = #tpu.pipeline_mode<synchronous>, transform_indices = @transform_4, window_bounds = array<i64: 9, 1, 256>}, {transform_indices = @transform_5, window_bounds = array<i64: 16, 256>}, {transform_indices = @transform_6, window_bounds = array<i64: 16, 256>}]} {
    %c0 = arith.constant 0 : index
    %c0_0 = arith.constant 0 : index
    %0 = vector.load %arg1[%c0, %c0_0] : memref<16x16xf32, #tpu.memory_space<vmem>>, vector<16x16xf32>
    %c0_1 = arith.constant 0 : index
    %c0_2 = arith.constant 0 : index
    %c0_3 = arith.constant 0 : index
    %1 = vector.load %arg5[%c0_1, %c0_2, %c0_3] : memref<9x1x256xf32, #tpu.memory_space<vmem>>, vector<1x1x256xf32>
    %2 = vector.shape_cast %1 : vector<1x1x256xf32> to vector<1x256xf32>
    %c1 = arith.constant 1 : index
    %c0_4 = arith.constant 0 : index
    %c0_5 = arith.constant 0 : index
    %3 = vector.load %arg5[%c1, %c0_4, %c0_5] : memref<9x1x256xf32, #tpu.memory_space<vmem>>, vector<1x1x256xf32>
    %4 = vector.shape_cast %3 : vector<1x1x256xf32> to vector<1x256xf32>
    %c2 = arith.constant 2 : index
    %c0_6 = arith.constant 0 : index
    %c0_7 = arith.constant 0 : index
    %5 = vector.load %arg5[%c2, %c0_6, %c0_7] : memref<9x1x256xf32, #tpu.memory_space<vmem>>, vector<1x1x256xf32>
    %6 = vector.shape_cast %5 : vector<1x1x256xf32> to vector<1x256xf32>
    %c3 = arith.constant 3 : index
    %c0_8 = arith.constant 0 : index
    %c0_9 = arith.constant 0 : index
    %7 = vector.load %arg5[%c3, %c0_8, %c0_9] : memref<9x1x256xf32, #tpu.memory_space<vmem>>, vector<1x1x256xf32>
    %8 = vector.shape_cast %7 : vector<1x1x256xf32> to vector<1x256xf32>
    %c5 = arith.constant 5 : index
    %c0_10 = arith.constant 0 : index
    %c0_11 = arith.constant 0 : index
    %9 = vector.load %arg5[%c5, %c0_10, %c0_11] : memref<9x1x256xf32, #tpu.memory_space<vmem>>, vector<1x1x256xf32>
    %10 = vector.shape_cast %9 : vector<1x1x256xf32> to vector<1x256xf32>
    %c6 = arith.constant 6 : index
    %c0_12 = arith.constant 0 : index
    %c0_13 = arith.constant 0 : index
    %11 = vector.load %arg5[%c6, %c0_12, %c0_13] : memref<9x1x256xf32, #tpu.memory_space<vmem>>, vector<1x1x256xf32>
    %12 = vector.shape_cast %11 : vector<1x1x256xf32> to vector<1x256xf32>
    %c7 = arith.constant 7 : index
    %c0_14 = arith.constant 0 : index
    %c0_15 = arith.constant 0 : index
    %13 = vector.load %arg5[%c7, %c0_14, %c0_15] : memref<9x1x256xf32, #tpu.memory_space<vmem>>, vector<1x1x256xf32>
    %14 = vector.shape_cast %13 : vector<1x1x256xf32> to vector<1x256xf32>
    %c8 = arith.constant 8 : index
    %c0_16 = arith.constant 0 : index
    %c0_17 = arith.constant 0 : index
    %15 = vector.load %arg5[%c8, %c0_16, %c0_17] : memref<9x1x256xf32, #tpu.memory_space<vmem>>, vector<1x1x256xf32>
    %16 = vector.shape_cast %15 : vector<1x1x256xf32> to vector<1x256xf32>
    %c0_18 = arith.constant 0 : index
    %c0_19 = arith.constant 0 : index
    %17 = vector.load %arg6[%c0_18, %c0_19] : memref<16x256xf32, #tpu.memory_space<vmem>>, vector<16x256xf32>
    %c0_20 = arith.constant 0 : index
    %c0_21 = arith.constant 0 : index
    %18 = vector.load %arg2[%c0_20, %c0_21] : memref<16x144xf32, #tpu.memory_space<vmem>>, vector<16x144xf32>
    %c17_i32 = arith.constant 17 : i32
    %19 = tpu.dynamic_rotate %17 by %c17_i32 dim 1 : vector<16x256xf32>, i32 -> vector<16x256xf32>
    %20 = vector.broadcast %2 : vector<1x256xf32> to vector<16x256xf32>
    %21 = arith.mulf %19, %20 : vector<16x256xf32>
    %c16_i32 = arith.constant 16 : i32
    %22 = tpu.dynamic_rotate %17 by %c16_i32 dim 1 : vector<16x256xf32>, i32 -> vector<16x256xf32>
    %23 = vector.broadcast %4 : vector<1x256xf32> to vector<16x256xf32>
    %24 = arith.mulf %22, %23 : vector<16x256xf32>
    %c15_i32 = arith.constant 15 : i32
    %25 = tpu.dynamic_rotate %17 by %c15_i32 dim 1 : vector<16x256xf32>, i32 -> vector<16x256xf32>
    %26 = vector.broadcast %6 : vector<1x256xf32> to vector<16x256xf32>
    %27 = arith.mulf %25, %26 : vector<16x256xf32>
    %c1_i32 = arith.constant 1 : i32
    %28 = tpu.dynamic_rotate %17 by %c1_i32 dim 1 : vector<16x256xf32>, i32 -> vector<16x256xf32>
    %29 = vector.broadcast %8 : vector<1x256xf32> to vector<16x256xf32>
    %30 = arith.mulf %28, %29 : vector<16x256xf32>
    %c255_i32 = arith.constant 255 : i32
    %31 = tpu.dynamic_rotate %17 by %c255_i32 dim 1 : vector<16x256xf32>, i32 -> vector<16x256xf32>
    %32 = vector.broadcast %10 : vector<1x256xf32> to vector<16x256xf32>
    %33 = arith.mulf %31, %32 : vector<16x256xf32>
    %c241_i32 = arith.constant 241 : i32
    %34 = tpu.dynamic_rotate %17 by %c241_i32 dim 1 : vector<16x256xf32>, i32 -> vector<16x256xf32>
    %35 = vector.broadcast %12 : vector<1x256xf32> to vector<16x256xf32>
    %36 = arith.mulf %34, %35 : vector<16x256xf32>
    %c240_i32 = arith.constant 240 : i32
    %37 = tpu.dynamic_rotate %17 by %c240_i32 dim 1 : vector<16x256xf32>, i32 -> vector<16x256xf32>
    %38 = vector.broadcast %14 : vector<1x256xf32> to vector<16x256xf32>
    %39 = arith.mulf %37, %38 : vector<16x256xf32>
    %c239_i32 = arith.constant 239 : i32
    %40 = tpu.dynamic_rotate %17 by %c239_i32 dim 1 : vector<16x256xf32>, i32 -> vector<16x256xf32>
    %41 = vector.broadcast %16 : vector<1x256xf32> to vector<16x256xf32>
    %42 = arith.mulf %40, %41 : vector<16x256xf32>
    %43 = tpu.concatenate %21, %24, %27, %30, %17, %33, %36, %39, %42 in 0 : vector<16x256xf32>, vector<16x256xf32>, vector<16x256xf32>, vector<16x256xf32>, vector<16x256xf32>, vector<16x256xf32>, vector<16x256xf32>, vector<16x256xf32>, vector<16x256xf32> -> vector<144x256xf32>
    %cst = arith.constant dense<0.000000e+00> : vector<16x256xf32>
    %44 = tpu.matmul %18, %43, %cst {dimension_numbers = #tpu.dot_dimension_numbers<[1], [0], [0], [1], [0, 0, 1, 1], [], []>} : vector<16x144xf32>, vector<144x256xf32>, vector<16x256xf32> -> vector<16x256xf32>
    %c0_22 = arith.constant 0 : index
    %c0_23 = arith.constant 0 : index
    %45 = vector.load %arg4[%c0_22, %c0_23] : memref<16x6xf32, #tpu.memory_space<vmem>>, vector<16x1xf32>
    %46 = vector.broadcast %45 : vector<16x1xf32> to vector<16x256xf32>
    %47 = arith.addf %44, %46 : vector<16x256xf32>
    %c0_24 = arith.constant 0 : index
    %c1_25 = arith.constant 1 : index
    %48 = vector.load %arg4[%c0_24, %c1_25] : memref<16x6xf32, #tpu.memory_space<vmem>>, vector<16x1xf32>
    %c0_26 = arith.constant 0 : index
    %c2_27 = arith.constant 2 : index
    %49 = vector.load %arg4[%c0_26, %c2_27] : memref<16x6xf32, #tpu.memory_space<vmem>>, vector<16x1xf32>
    %cst_28 = arith.constant dense<0.000000e+00> : vector<16xf32>
    %50 = vector.multi_reduction <add>, %47, %cst_28 [1] : vector<16x256xf32> to vector<16xf32>
    %51 = vector.shape_cast %50 : vector<16xf32> to vector<16x1xf32>
    %cst_29 = arith.constant dense<0.000000e+00> : vector<16x1xf32>
    %52 = tpu.matmul %0, %51, %cst_29 {dimension_numbers = #tpu.dot_dimension_numbers<[1], [0], [0], [1], [0, 0, 1, 1], [], []>} : vector<16x16xf32>, vector<16x1xf32>, vector<16x1xf32> -> vector<16x1xf32>
    %cst_30 = arith.constant 3.906250e-03 : f32
    %53 = vector.broadcast %cst_30 : f32 to vector<16x1xf32>
    %54 = arith.mulf %52, %53 : vector<16x1xf32>
    %55 = vector.broadcast %54 : vector<16x1xf32> to vector<16x256xf32>
    %56 = arith.subf %47, %55 : vector<16x256xf32>
    %57 = arith.mulf %56, %56 : vector<16x256xf32>
    %cst_31 = arith.constant dense<0.000000e+00> : vector<16xf32>
    %58 = vector.multi_reduction <add>, %57, %cst_31 [1] : vector<16x256xf32> to vector<16xf32>
    %59 = vector.shape_cast %58 : vector<16xf32> to vector<16x1xf32>
    %cst_32 = arith.constant dense<0.000000e+00> : vector<16x1xf32>
    %60 = tpu.matmul %0, %59, %cst_32 {dimension_numbers = #tpu.dot_dimension_numbers<[1], [0], [0], [1], [0, 0, 1, 1], [], []>} : vector<16x16xf32>, vector<16x1xf32>, vector<16x1xf32> -> vector<16x1xf32>
    %cst_33 = arith.constant 3.906250e-03 : f32
    %61 = vector.broadcast %cst_33 : f32 to vector<16x1xf32>
    %62 = arith.mulf %60, %61 : vector<16x1xf32>
    %cst_34 = arith.constant 9.99999974E-6 : f32
    %63 = vector.broadcast %cst_34 : f32 to vector<16x1xf32>
    %64 = arith.addf %62, %63 : vector<16x1xf32>
    %65 = math.rsqrt %64 : vector<16x1xf32>
    %cst_35 = arith.constant 5.000000e-01 : f32
    %66 = vector.broadcast %cst_35 : f32 to vector<16x1xf32>
    %67 = arith.mulf %66, %64 : vector<16x1xf32>
    %68 = arith.mulf %67, %65 : vector<16x1xf32>
    %69 = arith.mulf %68, %65 : vector<16x1xf32>
    %cst_36 = arith.constant 1.500000e+00 : f32
    %70 = vector.broadcast %cst_36 : f32 to vector<16x1xf32>
    %71 = arith.subf %70, %69 : vector<16x1xf32>
    %72 = arith.mulf %65, %71 : vector<16x1xf32>
    %73 = arith.mulf %72, %48 : vector<16x1xf32>
    %74 = vector.broadcast %73 : vector<16x1xf32> to vector<16x256xf32>
    %75 = arith.mulf %56, %74 : vector<16x256xf32>
    %76 = vector.broadcast %49 : vector<16x1xf32> to vector<16x256xf32>
    %77 = arith.addf %75, %76 : vector<16x256xf32>
    %cst_37 = arith.constant 0.000000e+00 : f32
    %78 = vector.broadcast %cst_37 : f32 to vector<16x256xf32>
    %79 = arith.cmpf ogt, %77, %78 : vector<16x256xf32>
    %cst_38 = arith.constant 0.00999999977 : f32
    %80 = vector.broadcast %cst_38 : f32 to vector<16x256xf32>
    %81 = arith.mulf %80, %77 : vector<16x256xf32>
    %82 = arith.select %79, %77, %81 : vector<16x256xi1>, vector<16x256xf32>
    %c0_39 = arith.constant 0 : index
    %c0_40 = arith.constant 0 : index
    %83 = vector.load %arg3[%c0_39, %c0_40] : memref<16x144xf32, #tpu.memory_space<vmem>>, vector<16x144xf32>
    %c17_i32_41 = arith.constant 17 : i32
    %84 = tpu.dynamic_rotate %82 by %c17_i32_41 dim 1 : vector<16x256xf32>, i32 -> vector<16x256xf32>
    %85 = vector.broadcast %2 : vector<1x256xf32> to vector<16x256xf32>
    %86 = arith.mulf %84, %85 : vector<16x256xf32>
    %c16_i32_42 = arith.constant 16 : i32
    %87 = tpu.dynamic_rotate %82 by %c16_i32_42 dim 1 : vector<16x256xf32>, i32 -> vector<16x256xf32>
    %88 = vector.broadcast %4 : vector<1x256xf32> to vector<16x256xf32>
    %89 = arith.mulf %87, %88 : vector<16x256xf32>
    %c15_i32_43 = arith.constant 15 : i32
    %90 = tpu.dynamic_rotate %82 by %c15_i32_43 dim 1 : vector<16x256xf32>, i32 -> vector<16x256xf32>
    %91 = vector.broadcast %6 : vector<1x256xf32> to vector<16x256xf32>
    %92 = arith.mulf %90, %91 : vector<16x256xf32>
    %c1_i32_44 = arith.constant 1 : i32
    %93 = tpu.dynamic_rotate %82 by %c1_i32_44 dim 1 : vector<16x256xf32>, i32 -> vector<16x256xf32>
    %94 = vector.broadcast %8 : vector<1x256xf32> to vector<16x256xf32>
    %95 = arith.mulf %93, %94 : vector<16x256xf32>
    %c255_i32_45 = arith.constant 255 : i32
    %96 = tpu.dynamic_rotate %82 by %c255_i32_45 dim 1 : vector<16x256xf32>, i32 -> vector<16x256xf32>
    %97 = vector.broadcast %10 : vector<1x256xf32> to vector<16x256xf32>
    %98 = arith.mulf %96, %97 : vector<16x256xf32>
    %c241_i32_46 = arith.constant 241 : i32
    %99 = tpu.dynamic_rotate %82 by %c241_i32_46 dim 1 : vector<16x256xf32>, i32 -> vector<16x256xf32>
    %100 = vector.broadcast %12 : vector<1x256xf32> to vector<16x256xf32>
    %101 = arith.mulf %99, %100 : vector<16x256xf32>
    %c240_i32_47 = arith.constant 240 : i32
    %102 = tpu.dynamic_rotate %82 by %c240_i32_47 dim 1 : vector<16x256xf32>, i32 -> vector<16x256xf32>
    %103 = vector.broadcast %14 : vector<1x256xf32> to vector<16x256xf32>
    %104 = arith.mulf %102, %103 : vector<16x256xf32>
    %c239_i32_48 = arith.constant 239 : i32
    %105 = tpu.dynamic_rotate %82 by %c239_i32_48 dim 1 : vector<16x256xf32>, i32 -> vector<16x256xf32>
    %106 = vector.broadcast %16 : vector<1x256xf32> to vector<16x256xf32>
    %107 = arith.mulf %105, %106 : vector<16x256xf32>
    %108 = tpu.concatenate %86, %89, %92, %95, %82, %98, %101, %104, %107 in 0 : vector<16x256xf32>, vector<16x256xf32>, vector<16x256xf32>, vector<16x256xf32>, vector<16x256xf32>, vector<16x256xf32>, vector<16x256xf32>, vector<16x256xf32>, vector<16x256xf32> -> vector<144x256xf32>
    %cst_49 = arith.constant dense<0.000000e+00> : vector<16x256xf32>
    %109 = tpu.matmul %83, %108, %cst_49 {dimension_numbers = #tpu.dot_dimension_numbers<[1], [0], [0], [1], [0, 0, 1, 1], [], []>} : vector<16x144xf32>, vector<144x256xf32>, vector<16x256xf32> -> vector<16x256xf32>
    %c0_50 = arith.constant 0 : index
    %c3_51 = arith.constant 3 : index
    %110 = vector.load %arg4[%c0_50, %c3_51] : memref<16x6xf32, #tpu.memory_space<vmem>>, vector<16x1xf32>
    %111 = vector.broadcast %110 : vector<16x1xf32> to vector<16x256xf32>
    %112 = arith.addf %109, %111 : vector<16x256xf32>
    %c0_52 = arith.constant 0 : index
    %c4 = arith.constant 4 : index
    %113 = vector.load %arg4[%c0_52, %c4] : memref<16x6xf32, #tpu.memory_space<vmem>>, vector<16x1xf32>
    %c0_53 = arith.constant 0 : index
    %c5_54 = arith.constant 5 : index
    %114 = vector.load %arg4[%c0_53, %c5_54] : memref<16x6xf32, #tpu.memory_space<vmem>>, vector<16x1xf32>
    %cst_55 = arith.constant dense<0.000000e+00> : vector<16xf32>
    %115 = vector.multi_reduction <add>, %112, %cst_55 [1] : vector<16x256xf32> to vector<16xf32>
    %116 = vector.shape_cast %115 : vector<16xf32> to vector<16x1xf32>
    %cst_56 = arith.constant dense<0.000000e+00> : vector<16x1xf32>
    %117 = tpu.matmul %0, %116, %cst_56 {dimension_numbers = #tpu.dot_dimension_numbers<[1], [0], [0], [1], [0, 0, 1, 1], [], []>} : vector<16x16xf32>, vector<16x1xf32>, vector<16x1xf32> -> vector<16x1xf32>
    %cst_57 = arith.constant 3.906250e-03 : f32
    %118 = vector.broadcast %cst_57 : f32 to vector<16x1xf32>
    %119 = arith.mulf %117, %118 : vector<16x1xf32>
    %120 = vector.broadcast %119 : vector<16x1xf32> to vector<16x256xf32>
    %121 = arith.subf %112, %120 : vector<16x256xf32>
    %122 = arith.mulf %121, %121 : vector<16x256xf32>
    %cst_58 = arith.constant dense<0.000000e+00> : vector<16xf32>
    %123 = vector.multi_reduction <add>, %122, %cst_58 [1] : vector<16x256xf32> to vector<16xf32>
    %124 = vector.shape_cast %123 : vector<16xf32> to vector<16x1xf32>
    %cst_59 = arith.constant dense<0.000000e+00> : vector<16x1xf32>
    %125 = tpu.matmul %0, %124, %cst_59 {dimension_numbers = #tpu.dot_dimension_numbers<[1], [0], [0], [1], [0, 0, 1, 1], [], []>} : vector<16x16xf32>, vector<16x1xf32>, vector<16x1xf32> -> vector<16x1xf32>
    %cst_60 = arith.constant 3.906250e-03 : f32
    %126 = vector.broadcast %cst_60 : f32 to vector<16x1xf32>
    %127 = arith.mulf %125, %126 : vector<16x1xf32>
    %cst_61 = arith.constant 9.99999974E-6 : f32
    %128 = vector.broadcast %cst_61 : f32 to vector<16x1xf32>
    %129 = arith.addf %127, %128 : vector<16x1xf32>
    %130 = math.rsqrt %129 : vector<16x1xf32>
    %cst_62 = arith.constant 5.000000e-01 : f32
    %131 = vector.broadcast %cst_62 : f32 to vector<16x1xf32>
    %132 = arith.mulf %131, %129 : vector<16x1xf32>
    %133 = arith.mulf %132, %130 : vector<16x1xf32>
    %134 = arith.mulf %133, %130 : vector<16x1xf32>
    %cst_63 = arith.constant 1.500000e+00 : f32
    %135 = vector.broadcast %cst_63 : f32 to vector<16x1xf32>
    %136 = arith.subf %135, %134 : vector<16x1xf32>
    %137 = arith.mulf %130, %136 : vector<16x1xf32>
    %138 = arith.mulf %137, %113 : vector<16x1xf32>
    %139 = vector.broadcast %138 : vector<16x1xf32> to vector<16x256xf32>
    %140 = arith.mulf %121, %139 : vector<16x256xf32>
    %141 = vector.broadcast %114 : vector<16x1xf32> to vector<16x256xf32>
    %142 = arith.addf %140, %141 : vector<16x256xf32>
    %143 = arith.addf %17, %142 : vector<16x256xf32>
    %cst_64 = arith.constant 0.000000e+00 : f32
    %144 = vector.broadcast %cst_64 : f32 to vector<16x256xf32>
    %145 = arith.cmpf ogt, %143, %144 : vector<16x256xf32>
    %cst_65 = arith.constant 0.00999999977 : f32
    %146 = vector.broadcast %cst_65 : f32 to vector<16x256xf32>
    %147 = arith.mulf %146, %143 : vector<16x256xf32>
    %148 = arith.select %145, %143, %147 : vector<16x256xi1>, vector<16x256xf32>
    %c0_66 = arith.constant 0 : index
    %c0_67 = arith.constant 0 : index
    %149 = vector.load %arg7[%c0_66, %c0_67] : memref<16x256xf32, #tpu.memory_space<vmem>>, vector<16x256xf32>
    tpu.vector_store %arg7[%c0_66, %c0_67], %148 {strides = array<i32>} : memref<16x256xf32, #tpu.memory_space<vmem>>, vector<16x256xf32>,
    return
  }
  func.func @transform_0(%arg0: i32) -> (i32, i32) {
    %c0_i32 = arith.constant 0 : i32
    %c0_i32_0 = arith.constant 0 : i32
    %c0_i32_1 = arith.constant 0 : i32
    return %c0_i32, %c0_i32_0 : i32, i32
  }
  func.func @transform_1(%arg0: i32) -> (i32, i32) {
    %c0_i32 = arith.constant 0 : i32
    %c0_i32_0 = arith.constant 0 : i32
    %c0_i32_1 = arith.constant 0 : i32
    return %c0_i32, %c0_i32_0 : i32, i32
  }
  func.func @transform_2(%arg0: i32) -> (i32, i32) {
    %c0_i32 = arith.constant 0 : i32
    %c0_i32_0 = arith.constant 0 : i32
    %c0_i32_1 = arith.constant 0 : i32
    return %c0_i32, %c0_i32_0 : i32, i32
  }
  func.func @transform_3(%arg0: i32) -> (i32, i32) {
    %c0_i32 = arith.constant 0 : i32
    %c0_i32_0 = arith.constant 0 : i32
    %c0_i32_1 = arith.constant 0 : i32
    return %c0_i32, %c0_i32_0 : i32, i32
  }
  func.func @transform_4(%arg0: i32) -> (i32, i32, i32) {
    %c0_i32 = arith.constant 0 : i32
    %c0_i32_0 = arith.constant 0 : i32
    %c0_i32_1 = arith.constant 0 : i32
    %c0_i32_2 = arith.constant 0 : i32
    return %c0_i32, %c0_i32_0, %c0_i32_1 : i32, i32, i32
  }
  func.func @transform_5(%arg0: i32) -> (i32, i32) {
    %c0_i32 = arith.constant 0 : i32
    %c0_i32_0 = arith.constant 0 : i32
    return %c0_i32, %arg0 : i32, i32
  }
  func.func @transform_6(%arg0: i32) -> (i32, i32) {
    %c0_i32 = arith.constant 0 : i32
    %c0_i32_0 = arith.constant 0 : i32
    return %c0_i32, %arg0 : i32, i32
  }
}

</mosaic_0001>

<bundles_post_ra>
// kernel: resblock_forward.1
= control target key start
LH: loop header
LB: loop body
LE: loop exit
PB: predicated region body
PF: predicated region fallthrough
CT: control target
= control target key end

     0   :  { %s1736_s21 = smov 0   ;;  %s1738_s22 = smov 0   ;;  %s2346_s0 = inlined_call_operand.vmem [shape: f32[16,16], index: 0, kind: input, shape index: {}]   ;;  %s2347_s1 = inlined_call_operand.vmem [shape: f32[16,144], index: 1, kind: input, shape index: {}]   ;;  %s2348_s2 = inlined_call_operand.vmem [shape: f32[16,144], index: 2, kind: input, shape index: {}]   ;;  %s2349_s3 = inlined_call_operand.vmem [shape: f32[16,6], index: 3, kind: input, shape index: {}]   ;;  %s2350_s4 = inlined_call_operand.vmem [shape: f32[9,1,256], index: 4, kind: input, shape index: {}]   ;;  %s2351_s5 = inlined_call_operand.vmem [shape: f32[16,512], index: 5, kind: input, shape index: {}]   ;;  %s2352_s6 = inlined_call_operand.vmem [shape: f32[16,512], index: 6, kind: output, shape index: {}]  }
   0x1   :  { %s1740_s23 = smov 0  }
   0x2 LB: > { %s1435_s24 = sadd.s32 4294967295, %s1686_s23   ;;  %s1753_s25 = sadd.s32 1, %s1686_s23   ;;  %s1686_s23 = sphi %s1740_s23, %s2356_s23   ;;  %s1682_s22 = sphi %s1738_s22, %s2355_s22   ;;  %s1678_s21 = sphi %s1736_s21, %s2354_s21  }
   0x3   : > { %s125_s26 = ssub.s32 %s1686_s23, %s1753_s25  ;;  %s128_s27 = sadd.s32 1, %s1682_s22 }
   0x4   : > { %p126_p0 = scmp.eq.s32.totalorder %s125_s26, 0  ;;  %p135_p1 = scmp.ne.s32.totalorder %s1682_s22, %s1678_s21 }
   0x5   : > { %p136_p2 = scmp.eq.s32.totalorder %s1686_s23, 0  ;;  %p165_p3 = scmp.eq.s32.totalorder %s1435_s24, 1 }
   0x6   : > { %s1764_s28 = scalar_select %p126_p0, %s1682_s22, %s128_s27  }
   0x7   : > { %p137_p4 = por %p136_p2, %p135_p1  ;;  %p1766_p5 = por %p165_p3, %p135_p1 }
   0x8   : > { %p1438_p6 = scmp.ge.s32.totalorder %s1686_s23, 2 }
   0xa   : > { %202 = sbr.rel (%p1438_p6) target bundleno = 24 (0x18), region = 36 }
  0x11   : > { %205 = sbr.rel (!%p137_p4) target bundleno = 24 (0x18), region = 40  ;;  %s207_s30 = sand.u32 (%p137_p4), 1, %s1682_s22  }
  0x12   : > { %s1469_s7 = sshll.u32 (%p137_p4), %s1686_s23, 4  ;;  %s1439_s8 = sshll.u32 (%p137_p4), %s207_s30, 5 }
  0x13   : > { %s212_s11 = scalar_lea.vmem (%p137_p4), %s2351_s5, %s1469_s7  ;;  %s209_s12 = scalar_lea.vmem (%p137_p4), [#allocation2], %s1439_s8 }
  0x14   : > { %v225_v0 = vld [vmem:[%s212_s11] sm:$0xff] (%p137_p4)  ;;  %v227_v1 = vld [vmem:[%s212_s11 + $0x8] sm:$0xff] (%p137_p4) }
  0x15   : > { %v229_v2 = vld [vmem:[%s212_s11 + $0x20] sm:$0xff] (%p137_p4)  ;;  %226 = vst [vmem:[%s209_s12] sm:$0xff] (%p137_p4), %v225_v0  ;;  %228 = vst [vmem:[%s209_s12 + $0x8] sm:$0xff] (%p137_p4), %v227_v1  ;;  %v231_v3 = vld [vmem:[%s212_s11 + $0x28] sm:$0xff] (%p137_p4) }
  0x16   : > { %230 = vst [vmem:[%s209_s12 + $0x10] sm:$0xff] (%p137_p4), %v229_v2  ;;  %232 = vst [vmem:[%s209_s12 + $0x18] sm:$0xff] (%p137_p4), %v231_v3 }
  0x18 PF: > { %p1442_p7 = scmp.ge.s32.totalorder %s1686_s23, 1  ;;  %p237_p8 = scmp.lt.s32.totalorder %s1686_s23, 3 }
  0x1a   : > { %p238_p9 = pnand %p1442_p7, %p237_p8 }
  0x1b   : > { %s244_s13 = sand.u32 (!%p238_p9), 1, %s1678_s21   ;;  %s1688_s16 = smov (!%p238_p9), 17   ;;  %v296_v8 = vld [vmem:[%s2347_s1 + $0x8] sm:$0xff] (!%p238_p9)  ;;  %vm537_vm0 = vcmask (!%p238_p9), 130048   ;;  %v1696_v9 = vmov (!%p238_p9), 0   ;;  %v1868_v10 = vld [vmem:[%s2349_s3] sm:$0xff] (!%p238_p9)  ;;  %v307_v12 = vlaneseq (!%p238_p9) }
  0x1c   : > { %241 = sbr.rel (%p238_p9) target bundleno = 2901 (0xb55), region = 63  ;;  %s1779_s14 = sshll.u32 (!%p238_p9), %s244_s13, 5  ;;  %1452 = vmatprep.mubr.msk.f32.mxu0 (!%p238_p9), %vm537_vm0, %v296_v8  ;;  %1640 = vset.pattern.permute.xlu0 (!%p238_p9), %v1696_v9  ;;  %v1874_v11 = vld [vmem:[%s2349_s3 + $0x8] sm:$0xff] (!%p238_p9)  ;;  %v276_v17 = vld [vmem:[%s2350_s4] sm:$0x3] (!%p238_p9) }
  0x1d   : > { %s1782_s15 = scalar_lea.vmem (!%p238_p9), [#allocation2], %s1779_s14  ;;  %s1689_s17 = smov (!%p238_p9), 16   ;;  %1641 = vset.pattern.permute.xlu1 (!%p238_p9), %v1696_v9  ;;  %v316_v13 = vshrl.u32 (!%p238_p9), %v307_v12, 7  ;;  %v1878_v14 = vand.u32 (!%p238_p9), 127, %v307_v12  ;;  %v1445_v32 = vld [vmem:[%s2350_s4 + $0x2] sm:$0x3] (!%p238_p9) }
  0x1e   : > { %v1785_v4 = vld [vmem:[%s1782_s15 + $0x8] sm:$0xff] (!%p238_p9)  ;;  %v1788_v5 = vld [vmem:[%s1782_s15] sm:$0xff] (!%p238_p9)  ;;  %v1795_v6 = vld [vmem:[%s1782_s15 + $0x18] sm:$0xff] (!%p238_p9)  ;;  %s1690_s18 = smov (!%p238_p9), 15   ;;  %s1691_s19 = smov (!%p238_p9), 1  }
  0x1f   : > { %303 = vrot.lane.b32.xlu1 (!%p238_p9), %v1785_v4, %s1688_s16  ;;  %299 = vrot.lane.b32.xlu0 (!%p238_p9), %v1788_v5, %s1688_s16  ;;  %v1798_v7 = vld [vmem:[%s1782_s15 + $0x10] sm:$0xff] (!%p238_p9)  ;;  %s1692_s20 = smov (!%p238_p9), 127   ;;  %s1693_s21 = smov (!%p238_p9), 113   ;;  %v1880_v15 = vsub.s32 (!%p238_p9), 0, %v316_v13  ;;  %v1882_v16 = vsub.s32 (!%p238_p9), 1, %v316_v13  ;;  %vm309_vm1 = vcmp.lt.s32.totalorder (!%p238_p9), %v1878_v14, 17 }
  0x20   : > { %s1694_s26 = smov (!%p238_p9), 112   ;;  %s1695_s7 = smov (!%p238_p9), 111   ;;  %vm337_vm2 = vcmp.lt.s32.totalorder (!%p238_p9), %v1878_v14, 16  ;;  %v1446_v49 = vld [vmem:[%s2350_s4 + $0x4] sm:$0x3] (!%p238_p9)  ;;  %vm365_vm3 = vcmp.lt.s32.totalorder (!%p238_p9), %v1878_v14, 15 }
  0x21   : > { %v1889_v20 = vrot.slane (!%p238_p9), %v276_v17, %v1880_v15  ;;  %v1892_v21 = vrot.slane (!%p238_p9), %v276_v17, %v1882_v16  ;;  %v1911_v37 = vrot.slane (!%p238_p9), %v1445_v32, %v1880_v15  ;;  %v1914_v38 = vrot.slane (!%p238_p9), %v1445_v32, %v1882_v16  ;;  %v1447_v2 = vld [vmem:[%s2350_s4 + $0x6] sm:$0x3] (!%p238_p9)  ;;  %s1699_s27 = smov (!%p238_p9), 124   ;;  %s271_s11 = scalar_lea.vmem (!%p238_p9), [#allocation3], %s1779_s14 }
  0x22   : > { %v1933_v54 = vrot.slane (!%p238_p9), %v1446_v49, %v1880_v15  ;;  %v1936_v55 = vrot.slane (!%p238_p9), %v1446_v49, %v1882_v16  ;;  %vm393_vm4 = vcmp.lt.s32.totalorder (!%p238_p9), %v1878_v14, 1  ;;  %v1955_v17 = vrot.slane (!%p238_p9), %v1447_v2, %v1880_v15 }
  0x23   : > { %305 = vrot.lane.b32.xlu1 %v1795_v6, %s1688_s16  ;;  %301 = vrot.lane.b32.xlu0 %v1798_v7, %s1688_s16  ;;  %vm421_vm5 = vcmp.lt.s32.totalorder %v1878_v14, 127  ;;  %vm449_vm6 = vcmp.lt.s32.totalorder %v1878_v14, 113  ;;  %vm477_vm7 = vcmp.lt.s32.totalorder %v1878_v14, 112  ;;  %vm505_vm8 = vcmp.lt.s32.totalorder %v1878_v14, 111  ;;  %v874_v14 = vld [vmem:[%s2348_s2 + $0x18] sm:$0xff]  ;;  %s1470_s14 = sshll.u32 (%p1766_p5), %s1435_s24, 4 }
  0x24   : > { %s1355_s13 = scalar_lea.vmem (%p1766_p5), %s2352_s6, %s1470_s14 }
  0x27   : > { %331 = vrot.lane.b32.xlu1 %v1798_v7, %s1689_s17  ;;  %329 = vrot.lane.b32.xlu0 %v1788_v5, %s1689_s17 }
  0x2b   : > { %335 = vrot.lane.b32.xlu1 %v1795_v6, %s1689_s17  ;;  %333 = vrot.lane.b32.xlu0 %v1785_v4, %s1689_s17 }
  0x2f   : > { %359 = vrot.lane.b32.xlu1 %v1798_v7, %s1690_s18  ;;  %357 = vrot.lane.b32.xlu0 %v1788_v5, %s1690_s18 }
  0x33   : > { %363 = vrot.lane.b32.xlu1 %v1795_v6, %s1690_s18  ;;  %361 = vrot.lane.b32.xlu0 %v1785_v4, %s1690_s18 }
  0x37   : > { %387 = vrot.lane.b32.xlu1 %v1798_v7, %s1691_s19  ;;  %385 = vrot.lane.b32.xlu0 %v1788_v5, %s1691_s19 }
  0x3b   : > { %391 = vrot.lane.b32.xlu1 %v1795_v6, %s1691_s19  ;;  %389 = vrot.lane.b32.xlu0 %v1785_v4, %s1691_s19 }
  0x3f   : > { %415 = vrot.lane.b32.xlu1 %v1798_v7, %s1692_s20  ;;  %413 = vrot.lane.b32.xlu0 %v1788_v5, %s1692_s20 }
  0x43   : > { %419 = vrot.lane.b32.xlu1 %v1795_v6, %s1692_s20  ;;  %417 = vrot.lane.b32.xlu0 %v1785_v4, %s1692_s20 }
  0x47   : > { %443 = vrot.lane.b32.xlu1 %v1798_v7, %s1693_s21  ;;  %441 = vrot.lane.b32.xlu0 %v1788_v5, %s1693_s21 }
  0x4b   : > { %447 = vrot.lane.b32.xlu1 %v1795_v6, %s1693_s21  ;;  %445 = vrot.lane.b32.xlu0 %v1785_v4, %s1693_s21 }
  0x4f   : > { %471 = vrot.lane.b32.xlu1 %v1798_v7, %s1694_s26  ;;  %469 = vrot.lane.b32.xlu0 %v1788_v5, %s1694_s26 }
  0x53   : > { %475 = vrot.lane.b32.xlu1 %v1795_v6, %s1694_s26  ;;  %473 = vrot.lane.b32.xlu0 %v1785_v4, %s1694_s26 }
  0x57   : > { %499 = vrot.lane.b32.xlu1 %v1798_v7, %s1695_s7  ;;  %497 = vrot.lane.b32.xlu0 %v1788_v5, %s1695_s7 }
  0x5b   : > { %503 = vrot.lane.b32.xlu1 %v1795_v6, %s1695_s7  ;;  %501 = vrot.lane.b32.xlu0 %v1785_v4, %s1695_s7 }
  0x5f   : > { %529 = vperm.xlu0 %1640, %v1868_v10   ;;  %534 = vperm.xlu1 %1641, %v1874_v11  }
  0x91   : > { %v304_v18 = vpop.permute.xlu1 %303  ;;  %v300_v19 = vpop.permute.xlu0 %299 }
  0x92   : > { %v310_v22 = vsel %vm309_vm1, %v300_v19, %v304_v18  ;;  %v312_v23 = vsel %vm309_vm1, %v304_v18, %v300_v19  ;;  %v1958_v18 = vrot.slane %v1447_v2, %v1882_v16 }
  0x93   : > { %v325_v28 = vmul.f32 %v1889_v20, %v312_v23  ;;  %v326_v30 = vmul.f32 %v1892_v21, %v310_v22 }
  0x95   : > { %v306_v24 = vpop.permute.xlu1 %305  ;;  %v302_v25 = vpop.permute.xlu0 %301 }
  0x96   : > { %v311_v26 = vsel %vm309_vm1, %v302_v25, %v306_v24  ;;  %v313_v27 = vsel %vm309_vm1, %v306_v24, %v302_v25 }
  0x97   : > { %v327_v29 = vmul.f32 %v1889_v20, %v313_v27  ;;  %v328_v31 = vmul.f32 %v1892_v21, %v311_v26 }
  0x99   : > { %v332_v33 = vpop.permute.xlu1 %331  ;;  %v330_v34 = vpop.permute.xlu0 %329  ;;  %v1515_v35 = vpack.c.bf16 %v328_v31, %v326_v30  ;;  %v1517_v36 = vpack.c.bf16 %v327_v29, %v325_v28  ;;  %v1448_v31 = vld [vmem:[%s2350_s4 + $0xa] sm:$0x3] }
  0x9b   : > { %1516 = vmatprep.subr.bf16.mxu0 %v1515_v35 }
  0x9c   : > { %1518 = vmatpush1.bf16.msra.mxu0 %v1517_v36  ;;  %v1531_v36 = vpack.c.bf16 %v1795_v6, %v1785_v4 }
  0x9d   : > { %v336_v39 = vpop.permute.xlu1 %335  ;;  %v334_v40 = vpop.permute.xlu0 %333 }
  0x9e   : > { %v339_v41 = vsel %vm337_vm2, %v332_v33, %v336_v39  ;;  %v341_v42 = vsel %vm337_vm2, %v336_v39, %v332_v33  ;;  %v338_v43 = vsel %vm337_vm2, %v330_v34, %v334_v40  ;;  %v340_v44 = vsel %vm337_vm2, %v334_v40, %v330_v34 }
  0x9f   : > { %v355_v45 = vmul.f32 %v1911_v37, %v341_v42  ;;  %v356_v46 = vmul.f32 %v1914_v38, %v339_v41  ;;  %v353_v47 = vmul.f32 %v1911_v37, %v340_v44  ;;  %v354_v48 = vmul.f32 %v1914_v38, %v338_v43 }
  0xa0   : > { %v1979_v39 = vrot.slane %v1448_v31, %v1880_v15  ;;  %v1982_v40 = vrot.slane %v1448_v31, %v1882_v16  ;;  %v1533_v41 = vpack.c.bf16 %v1798_v7, %v1788_v5 }
  0xa1   : > { %v360_v50 = vpop.permute.xlu1 %359  ;;  %v358_v51 = vpop.permute.xlu0 %357  ;;  %v1519_v52 = vpack.c.bf16 %v356_v46, %v354_v48  ;;  %v1521_v53 = vpack.c.bf16 %v355_v45, %v353_v47  ;;  %v1449_v48 = vld [vmem:[%s2350_s4 + $0xc] sm:$0x3] }
  0xa3   : > { %1520 = vmatprep.subr.bf16.mxu0 %v1519_v52 }
  0xa4   : > { %1522 = vmatpush1.bf16.msra.mxu0 %v1521_v53  ;;  %v2003_v53 = vrot.slane %v1449_v48, %v1880_v15 }
  0xa5   : > { %v364_v56 = vpop.permute.xlu1 %363  ;;  %v362_v57 = vpop.permute.xlu0 %361 }
  0xa6   : > { %v367_v58 = vsel %vm365_vm3, %v360_v50, %v364_v56  ;;  %v369_v59 = vsel %vm365_vm3, %v364_v56, %v360_v50  ;;  %v366_v60 = vsel %vm365_vm3, %v358_v51, %v362_v57  ;;  %v368_v61 = vsel %vm365_vm3, %v362_v57, %v358_v51 }
  0xa7   : > { %v383_v62 = vmul.f32 %v1933_v54, %v369_v59  ;;  %v384_v63 = vmul.f32 %v1936_v55, %v367_v58  ;;  %v381_v0 = vmul.f32 %v1933_v54, %v368_v61  ;;  %v382_v1 = vmul.f32 %v1936_v55, %v366_v60 }
  0xa8   : > { %v2006_v56 = vrot.slane %v1449_v48, %v1882_v16 }
  0xa9   : > { %v388_v3 = vpop.permute.xlu1 %387  ;;  %v386_v8 = vpop.permute.xlu0 %385  ;;  %v1523_v12 = vpack.c.bf16 %v384_v63, %v382_v1  ;;  %v1525_v13 = vpack.c.bf16 %v383_v62, %v381_v0 }
  0xab   : > { %1524 = vmatprep.subr.bf16.mxu0 %v1523_v12 }
  0xac   : > { %1526 = vmatpush1.bf16.msra.mxu0 %v1525_v13 }
  0xad   : > { %v392_v19 = vpop.permute.xlu1 %391  ;;  %v390_v22 = vpop.permute.xlu0 %389 }
  0xae   : > { %v395_v23 = vsel %vm393_vm4, %v388_v3, %v392_v19  ;;  %v397_v24 = vsel %vm393_vm4, %v392_v19, %v388_v3  ;;  %v394_v25 = vsel %vm393_vm4, %v386_v8, %v390_v22  ;;  %v396_v26 = vsel %vm393_vm4, %v390_v22, %v386_v8  ;;  %v1450_v3 = vld [vmem:[%s2350_s4 + $0xe] sm:$0x3] }
  0xaf   : > { %v411_v27 = vmul.f32 %v1955_v17, %v397_v24  ;;  %v412_v28 = vmul.f32 %v1958_v18, %v395_v23  ;;  %v409_v29 = vmul.f32 %v1955_v17, %v396_v26  ;;  %v410_v30 = vmul.f32 %v1958_v18, %v394_v25 }
  0xb0   : > { %v2025_v22 = vrot.slane %v1450_v3, %v1880_v15  ;;  %v2028_v23 = vrot.slane %v1450_v3, %v1882_v16 }
  0xb1   : > { %v416_v32 = vpop.permute.xlu1 %415  ;;  %v414_v33 = vpop.permute.xlu0 %413  ;;  %v1527_v34 = vpack.c.bf16 %v412_v28, %v410_v30  ;;  %v1529_v35 = vpack.c.bf16 %v411_v27, %v409_v29 }
  0xb3   : > { %1528 = vmatprep.subr.bf16.mxu0 %v1527_v34  ;;  %v1451_v34 = vld [vmem:[%s2350_s4 + $0x10] sm:$0x3] }
  0xb4   : > { %1530 = vmatpush1.bf16.msra.mxu0 %v1529_v35 }
  0xb5   : > { %v420_v42 = vpop.permute.xlu1 %419  ;;  %v418_v43 = vpop.permute.xlu0 %417  ;;  %1532 = vmatprep.subr.bf16.mxu0 %v1531_v36 }
  0xb6   : > { %v423_v44 = vsel %vm421_vm5, %v416_v32, %v420_v42  ;;  %v425_v4 = vsel %vm421_vm5, %v420_v42, %v416_v32  ;;  %v422_v6 = vsel %vm421_vm5, %v414_v33, %v418_v43  ;;  %v424_v45 = vsel %vm421_vm5, %v418_v43, %v414_v33 }
  0xb7   : > { %v439_v46 = vmul.f32 %v1979_v39, %v423_v44  ;;  %v440_v47 = vmul.f32 %v1982_v40, %v425_v4  ;;  %v437_v5 = vmul.f32 %v1979_v39, %v422_v6  ;;  %v438_v7 = vmul.f32 %v1982_v40, %v424_v45 }
  0xb8   : > { %1534 = vmatpush1.bf16.msra.mxu0 %v1533_v41  ;;  %v2047_v43 = vrot.slane %v1451_v34, %v1880_v15  ;;  %v2050_v44 = vrot.slane %v1451_v34, %v1882_v16 }
  0xb9   : > { %v444_v49 = vpop.permute.xlu1 %443  ;;  %v442_v50 = vpop.permute.xlu0 %441  ;;  %v1535_v51 = vpack.c.bf16 %v440_v47, %v438_v7  ;;  %v1537_v52 = vpack.c.bf16 %v439_v46, %v437_v5 }
  0xbb   : > { %1536 = vmatprep.subr.bf16.mxu0 %v1535_v51  ;;  %v295_v51 = vld [vmem:[%s2347_s1] sm:$0xff] }
  0xbc   : > { %1538 = vmatpush1.bf16.msra.mxu0 %v1537_v52  ;;  %v298_v52 = vld [vmem:[%s2347_s1 + $0x18] sm:$0xff] }
  0xbd   : > { %v448_v57 = vpop.permute.xlu1 %447  ;;  %v446_v58 = vpop.permute.xlu0 %445 }
  0xbe   : > { %v451_v59 = vsel %vm449_vm6, %v444_v49, %v448_v57  ;;  %v453_v60 = vsel %vm449_vm6, %v448_v57, %v444_v49  ;;  %v450_v61 = vsel %vm449_vm6, %v442_v50, %v446_v58  ;;  %v452_v62 = vsel %vm449_vm6, %v446_v58, %v442_v50  ;;  %v297_v57 = vld [vmem:[%s2347_s1 + $0x10] sm:$0xff] }
  0xbf   : > { %v467_v63 = vmul.f32 %v2003_v53, %v451_v59  ;;  %v468_v0 = vmul.f32 %v2006_v56, %v453_v60  ;;  %v465_v1 = vmul.f32 %v2003_v53, %v450_v61  ;;  %v466_v2 = vmul.f32 %v2006_v56, %v452_v62 }
  0xc1   : > { %v472_v8 = vpop.permute.xlu1 %471  ;;  %v470_v12 = vpop.permute.xlu0 %469  ;;  %v1539_v13 = vpack.c.bf16 %v468_v0, %v466_v2  ;;  %v1541_v19 = vpack.c.bf16 %v467_v63, %v465_v1 }
  0xc3   : > { %1540 = vmatprep.subr.bf16.mxu0 %v1539_v13  ;;  %v2077_v13 = vld [vmem:[%s2346_s0] sm:$0xff] }
  0xc4   : > { %1542 = vmatpush1.bf16.msra.mxu0 %v1541_v19  ;;  %1491 = vmatprep.mubr.msk.f32.mxu1 %vm537_vm0, %v2077_v13 }
  0xc5   : > { %v476_v24 = vpop.permute.xlu1 %475  ;;  %v474_v25 = vpop.permute.xlu0 %473 }
  0xc6   : > { %v479_v26 = vsel %vm477_vm7, %v472_v8, %v476_v24  ;;  %v481_v27 = vsel %vm477_vm7, %v476_v24, %v472_v8  ;;  %v478_v28 = vsel %vm477_vm7, %v470_v12, %v474_v25  ;;  %v480_v29 = vsel %vm477_vm7, %v474_v25, %v470_v12 }
  0xc7   : > { %v495_v30 = vmul.f32 %v2025_v22, %v479_v26  ;;  %v496_v31 = vmul.f32 %v2028_v23, %v481_v27  ;;  %v493_v32 = vmul.f32 %v2025_v22, %v478_v28  ;;  %v494_v33 = vmul.f32 %v2028_v23, %v480_v29  ;;  %v2086_v26 = vld [vmem:[%s2346_s0 + $0x8] sm:$0xff] }
  0xc9   : > { %v500_v35 = vpop.permute.xlu1 %499  ;;  %v498_v36 = vpop.permute.xlu0 %497  ;;  %v1543_v41 = vpack.c.bf16 %v496_v31, %v494_v33  ;;  %v1545_v42 = vpack.c.bf16 %v495_v30, %v493_v32 }
  0xcb   : > { %1544 = vmatprep.subr.bf16.mxu0 %v1543_v41 }
  0xcc   : > { %1546 = vmatpush1.bf16.msra.mxu0 %v1545_v42 }
  0xcd   : > { %v504_v4 = vpop.permute.xlu1 %503  ;;  %v502_v6 = vpop.permute.xlu0 %501 }
  0xce   : > { %v507_v45 = vsel %vm505_vm8, %v500_v35, %v504_v4  ;;  %v509_v46 = vsel %vm505_vm8, %v504_v4, %v500_v35  ;;  %v506_v47 = vsel %vm505_vm8, %v498_v36, %v502_v6  ;;  %v508_v5 = vsel %vm505_vm8, %v502_v6, %v498_v36 }
  0xcf   : > { %v523_v15 = vmul.f32 %v2047_v43, %v507_v45  ;;  %v524_v16 = vmul.f32 %v2050_v44, %v509_v46  ;;  %v521_v7 = vmul.f32 %v2047_v43, %v506_v47  ;;  %v522_v48 = vmul.f32 %v2050_v44, %v508_v5 }
  0xd1   : > { %v1547_v49 = vpack.c.bf16 %v524_v16, %v522_v48  ;;  %v1549_v50 = vpack.c.bf16 %v523_v15, %v521_v7 }
  0xd3   : > { %1548 = vmatprep.subr.bf16.mxu0 %v1547_v49 }
  0xd4   : > { %1550 = vmatpush1.bf16.msra.mxu0 %v1549_v50 }
  0xd7   : > { %609 = vmatmul.mubr.f32.vlgmr.msra.gmra.mrb[0].mxu0 %v295_v51 }
  0xd8   : > { %1453 = vmatprep.mubr.msk.f32.mxu0 %vm537_vm0, %v298_v52 }
  0xdb   : > { %615 = vmatmul.mubr.f32.gmra.mrb[2].mxu0 %v297_v57 }
  0xdc   : > { %1505 = vmatprep.mubr.msk.f32.mxu0 %vm537_vm0, %v2077_v13 }
  0xde   : > { %v530_v58 = vpop.permute.xlu0 %529  ;;  %v535_v63 = vpop.permute.xlu1 %534 }
 0x1aa   : > { %v610_v59 = vpop.f32.mrb[0].mxu0 }
 0x1ab   : > { %v611_v60 = vadd.f32 %v610_v59, %v530_v58  ;;  %v612_v61 = vpop.f32.mrb[1].mxu0 }
 0x1ac   : > { %v613_v62 = vadd.f32 %v612_v61, %v530_v58 }
 0x1ae   : > { %v616_v0 = vpop.f32.mrb[2].mxu0  ;;  %v621_v1 = vadd.f32 %v613_v62, %v611_v60 }
 0x1af   : > { %v617_v2 = vadd.f32 %v616_v0, %v535_v63  ;;  %v618_v3 = vpop.f32.mrb[3].mxu0 }
 0x1b0   : > { %v619_v8 = vadd.f32 %v618_v3, %v535_v63  ;;  %622 = vadd.xlane.f32.xlu1 %v621_v1 }
 0x1b2   : > { %v624_v12 = vadd.f32 %v619_v8, %v617_v2 }
 0x1b4   : > { %625 = vadd.xlane.f32.xlu0 %v624_v12 }
 0x23d   : > { %v623_v19 = vpop.xlane.xlu1 %622 }
 0x241   : > { %v626_v24 = vpop.xlane.xlu0 %625 }
 0x242   : > { %v1551_v25 = vpack.c.bf16 %v626_v24, %v623_v19 }
 0x244   : > { %1552 = vmatprep.subr.bf16.mxu1 %v1551_v25 }
 0x245   : > { %1554 = vmatpush3.bf16.msra.mxu1 %v1551_v25  ;;  %v1697_v25 = vmov 2  }
 0x248   : > { %1492 = vmatmul.mubr.msk.f32.vlgmr.msra.gmra.mrb[0].mxu1 %vm537_vm0, %v2086_v26 }
 0x249   : > { %1498 = vmatprep.mubr.msk.f32.mxu1 %vm537_vm0, %v2077_v13 }
 0x31b   : > { %v1493_v27 = vpop.f32.mrb[0].mxu1 }
 0x31c   : > { %v709_v28 = vmul.f32 0.00390625, %v1493_v27  ;;  %v699_v29 = vpop.f32.mrb[1].mxu1 }
 0x31d   : > { %v708_v30 = vmul.f32 0.00390625, %v699_v29 }
 0x31e   : > { %717 = vperm.xlu1 %1641, %v709_v28  }
 0x31f   : > { %712 = vperm.xlu0 %1640, %v708_v30  }
 0x39d   : > { %v718_v31 = vpop.permute.xlu1 %717 }
 0x39e   : > { %v722_v32 = vsub.f32 %v617_v2, %v718_v31  ;;  %v723_v33 = vsub.f32 %v619_v8, %v718_v31  ;;  %v713_v34 = vpop.permute.xlu0 %712 }
 0x39f   : > { %v720_v35 = vsub.f32 %v611_v60, %v713_v34  ;;  %v721_v36 = vsub.f32 %v613_v62, %v713_v34 }
 0x3a0   : > { %v726_v41 = vmul.f32 %v722_v32, %v722_v32  ;;  %v727_v42 = vmul.f32 %v723_v33, %v723_v33 }
 0x3a1   : > { %v724_v4 = vmul.f32 %v720_v35, %v720_v35  ;;  %v725_v6 = vmul.f32 %v721_v36, %v721_v36 }
 0x3a2   : > { %v731_v45 = vadd.f32 %v727_v42, %v726_v41 }
 0x3a3   : > { %v728_v46 = vadd.f32 %v725_v6, %v724_v4 }
 0x3a4   : > { %732 = vadd.xlane.f32.xlu0 %v731_v45 }
 0x3a5   : > { %729 = vadd.xlane.f32.xlu1 %v728_v46 }
 0x3b6   : > { %827 = vrot.lane.b32.xlu1 %v1874_v11, %s1692_s20 }
 0x3ba   : > { %825 = vrot.lane.b32.xlu0 %v1868_v10, %s1692_s20 }
 0x431   : > { %v733_v47 = vpop.xlane.xlu0 %732 }
 0x432   : > { %v730_v5 = vpop.xlane.xlu1 %729 }
 0x433   : > { %v1555_v15 = vpack.c.bf16 %v733_v47, %v730_v5 }
 0x435   : > { %1556 = vmatprep.subr.bf16.mxu1 %v1555_v15  ;;  %v826_v8 = vpop.permute.xlu0 %825 }
 0x436   : > { %1558 = vmatpush3.bf16.msra.mxu1 %v1555_v15  ;;  %v828_v1 = vpop.permute.xlu1 %827 }
 0x439   : > { %1499 = vmatmul.mubr.msk.f32.vlgmr.msra.gmra.mrb[2].mxu1 %vm537_vm0, %v2086_v26 }
 0x50c   : > { %v1500_v16 = vpop.f32.mrb[2].mxu1 }
 0x50d   : > { %v810_v7 = vmul.f32 0.00390625, %v1500_v16  ;;  %v800_v48 = vpop.f32.mrb[3].mxu1 }
 0x50e   : > { %v809_v49 = vmul.f32 0.00390625, %v800_v48 }
 0x50f   : > { %v812_v50 = vadd.f32 1e-05, %v810_v7 }
 0x510   : > { %v811_v51 = vadd.f32 1e-05, %v809_v49  ;;  %v872_v49 = vld [vmem:[%s2348_s2 + $0x8] sm:$0xff] }
 0x511   : > { %1650 = vrsqrt.f32 %v812_v50  ;;  %v816_v52 = vmul.f32 0.5, %v812_v50  ;;  %1458 = vmatprep.mubr.msk.f32.mxu1 %vm537_vm0, %v872_v49  ;;  %v1698_v50 = vmov 3  }
 0x512   : > { %1652 = vrsqrt.f32 %v811_v51  ;;  %v815_v58 = vmul.f32 0.5, %v811_v51 }
 0x51b   : > { %v1651_v57 = vpop.eup %1650 }
 0x51c   : > { %v1653_v59 = vpop.eup %1652  ;;  %v818_v60 = vmul.f32 %v1651_v57, %v816_v52 }
 0x51d   : > { %v817_v61 = vmul.f32 %v1653_v59, %v815_v58 }
 0x51e   : > { %v820_v62 = vmul.f32 %v1651_v57, %v818_v60 }
 0x51f   : > { %v819_v63 = vmul.f32 %v1653_v59, %v817_v61 }
 0x520   : > { %v822_v0 = vsub.f32 1.5, %v820_v62 }
 0x521   : > { %v821_v2 = vsub.f32 1.5, %v819_v63 }
 0x522   : > { %v824_v3 = vmul.f32 %v1651_v57, %v822_v0 }
 0x523   : > { %v823_v12 = vmul.f32 %v1653_v59, %v821_v2 }
 0x524   : > { %v832_v19 = vmul.f32 %v828_v1, %v824_v3 }
 0x525   : > { %v831_v24 = vmul.f32 %v826_v8, %v823_v12 }
 0x526   : > { %840 = vperm.xlu0 %1640, %v832_v19  }
 0x527   : > { %835 = vperm.xlu1 %1641, %v831_v24  }
 0x52a   : > { %1643 = vset.pattern.permute.xlu0 %v1697_v25 }
 0x52b   : > { %852 = vperm.xlu0 %1643, %v1874_v11   ;;  %1642 = vset.pattern.permute.xlu1 %v1697_v25 }
 0x52c   : > { %848 = vperm.xlu1 %1642, %v1868_v10  }
 0x52f   : > { %1644 = vset.pattern.permute.xlu0 %v1698_v50 }
 0x530   : > { %1645 = vset.pattern.permute.xlu1 %v1698_v50 }
 0x5a5   : > { %v841_v27 = vpop.permute.xlu0 %840 }
 0x5a6   : > { %v836_v28 = vpop.permute.xlu1 %835  ;;  %v845_v29 = vmul.f32 %v841_v27, %v722_v32  ;;  %v846_v30 = vmul.f32 %v841_v27, %v723_v33 }
 0x5a7   : > { %v843_v31 = vmul.f32 %v836_v28, %v720_v35  ;;  %v844_v34 = vmul.f32 %v836_v28, %v721_v36 }
 0x5aa   : > { %v853_v41 = vpop.permute.xlu0 %852 }
 0x5ab   : > { %v857_v42 = vadd.f32 %v853_v41, %v845_v29  ;;  %v858_v4 = vadd.f32 %v853_v41, %v846_v30  ;;  %v849_v6 = vpop.permute.xlu1 %848 }
 0x5ac   : > { %v855_v45 = vadd.f32 %v849_v6, %v843_v31  ;;  %v856_v46 = vadd.f32 %v849_v6, %v844_v34 }
 0x5ad   : > { %vm861_vm9 = vcmp.gt.f32.partialorder %v857_v42, 0.0  ;;  %vm862_vm10 = vcmp.gt.f32.partialorder %v858_v4, 0.0  ;;  %v865_v47 = vmul.f32 0.01, %v857_v42  ;;  %v866_v5 = vmul.f32 0.01, %v858_v4 }
 0x5ae   : > { %vm859_vm11 = vcmp.gt.f32.partialorder %v855_v45, 0.0  ;;  %vm860_vm12 = vcmp.gt.f32.partialorder %v856_v46, 0.0  ;;  %v863_v15 = vmul.f32 0.01, %v855_v45  ;;  %v864_v16 = vmul.f32 0.01, %v856_v46 }
 0x5af   : > { %v2100_v7 = vsel %vm861_vm9, %v857_v42, %v865_v47  ;;  %v2102_v32 = vsel %vm862_vm10, %v858_v4, %v866_v5 }
 0x5b0   : > { %v2104_v33 = vsel %vm859_vm11, %v855_v45, %v863_v15  ;;  %v2106_v35 = vsel %vm860_vm12, %v856_v46, %v864_v16  ;;  %877 = vrot.lane.b32.xlu1 %v2100_v7, %s1688_s16 }
 0x5b1   : > { %879 = vrot.lane.b32.xlu0 %v2106_v35, %s1688_s16  ;;  %v1575_v36 = vpack.c.bf16 %v2102_v32, %v2106_v35  ;;  %v1577_v48 = vpack.c.bf16 %v2100_v7, %v2104_v33 }
 0x5b4   : > { %881 = vrot.lane.b32.xlu1 %v2102_v32, %s1688_s16 }
 0x5b5   : > { %891 = vrot.lane.b32.xlu0 %v2104_v33, %s1689_s17 }
 0x5b8   : > { %893 = vrot.lane.b32.xlu1 %v2100_v7, %s1689_s17 }
 0x5b9   : > { %895 = vrot.lane.b32.xlu0 %v2106_v35, %s1689_s17 }
 0x5bc   : > { %897 = vrot.lane.b32.xlu1 %v2102_v32, %s1689_s17 }
 0x5bd   : > { %907 = vrot.lane.b32.xlu0 %v2104_v33, %s1690_s18 }
 0x5c0   : > { %909 = vrot.lane.b32.xlu1 %v2100_v7, %s1690_s18 }
 0x5c1   : > { %911 = vrot.lane.b32.xlu0 %v2106_v35, %s1690_s18 }
 0x5c4   : > { %913 = vrot.lane.b32.xlu1 %v2102_v32, %s1690_s18 }
 0x5c5   : > { %923 = vrot.lane.b32.xlu0 %v2104_v33, %s1691_s19 }
 0x5c8   : > { %925 = vrot.lane.b32.xlu1 %v2100_v7, %s1691_s19 }
 0x5c9   : > { %927 = vrot.lane.b32.xlu0 %v2106_v35, %s1691_s19 }
 0x5cc   : > { %929 = vrot.lane.b32.xlu1 %v2102_v32, %s1691_s19 }
 0x5cd   : > { %939 = vrot.lane.b32.xlu0 %v2104_v33, %s1692_s20 }
 0x5d0   : > { %875 = vrot.lane.b32.xlu1 %v2104_v33, %s1688_s16 }
 0x5d1   : > { %943 = vrot.lane.b32.xlu0 %v2106_v35, %s1692_s20 }
 0x5d4   : > { %941 = vrot.lane.b32.xlu1 %v2100_v7, %s1692_s20 }
 0x5d5   : > { %955 = vrot.lane.b32.xlu0 %v2104_v33, %s1693_s21 }
 0x5d8   : > { %945 = vrot.lane.b32.xlu1 %v2102_v32, %s1692_s20 }
 0x5d9   : > { %959 = vrot.lane.b32.xlu0 %v2106_v35, %s1693_s21 }
 0x5dc   : > { %957 = vrot.lane.b32.xlu1 %v2100_v7, %s1693_s21 }
 0x5dd   : > { %971 = vrot.lane.b32.xlu0 %v2104_v33, %s1694_s26 }
 0x5e0   : > { %961 = vrot.lane.b32.xlu1 %v2102_v32, %s1693_s21 }
 0x5e1   : > { %975 = vrot.lane.b32.xlu0 %v2106_v35, %s1694_s26 }
 0x5e4   : > { %973 = vrot.lane.b32.xlu1 %v2100_v7, %s1694_s26 }
 0x5e5   : > { %987 = vrot.lane.b32.xlu0 %v2104_v33, %s1695_s7 }
 0x5e8   : > { %977 = vrot.lane.b32.xlu1 %v2102_v32, %s1694_s26 }
 0x5e9   : > { %991 = vrot.lane.b32.xlu0 %v2106_v35, %s1695_s7 }
 0x5ec   : > { %989 = vrot.lane.b32.xlu1 %v2100_v7, %s1695_s7 }
 0x5ed   : > { %1004 = vperm.xlu0 %1644, %v1868_v10  }
 0x5f0   : > { %993 = vrot.lane.b32.xlu1 %v2102_v32, %s1695_s7 }
 0x5f1   : > { %1646 = vset.pattern.permute.xlu0 %v1696_v9 }
 0x5f4   : > { %1008 = vperm.xlu1 %1645, %v1874_v11  }
 0x5f8   : > { %1647 = vset.pattern.permute.xlu1 %v1696_v9 }
 0x622   : > { %v878_v51 = vpop.permute.xlu1 %877 }
 0x623   : > { %v880_v52 = vpop.permute.xlu0 %879 }
 0x626   : > { %v882_v57 = vpop.permute.xlu1 %881 }
 0x627   : > { %v892_v58 = vpop.permute.xlu0 %891  ;;  %v886_v19 = vsel %vm309_vm1, %v882_v57, %v878_v51  ;;  %v884_v9 = vsel %vm309_vm1, %v878_v51, %v882_v57 }
 0x628   : > { %v889_v27 = vmul.f32 %v886_v19, %v1889_v20  ;;  %v890_v29 = vmul.f32 %v884_v9, %v1892_v21 }
 0x62a   : > { %v894_v59 = vpop.permute.xlu1 %893 }
 0x62b   : > { %v896_v60 = vpop.permute.xlu0 %895 }
 0x62c   : > { %v899_v30 = vsel %vm337_vm2, %v892_v58, %v896_v60  ;;  %v901_v47 = vsel %vm337_vm2, %v896_v60, %v892_v58 }
 0x62d   : > { %v904_v5 = vmul.f32 %v899_v30, %v1914_v38  ;;  %v903_v58 = vmul.f32 %v901_v47, %v1911_v37 }
 0x62e   : > { %v898_v61 = vpop.permute.xlu1 %897 }
 0x62f   : > { %v908_v62 = vpop.permute.xlu0 %907  ;;  %v900_v25 = vsel %vm337_vm2, %v894_v59, %v898_v61  ;;  %v902_v42 = vsel %vm337_vm2, %v898_v61, %v894_v59 }
 0x630   : > { %v906_v4 = vmul.f32 %v900_v25, %v1914_v38  ;;  %v905_v50 = vmul.f32 %v902_v42, %v1911_v37 }
 0x632   : > { %v910_v63 = vpop.permute.xlu1 %909  ;;  %v1563_v57 = vpack.c.bf16 %v906_v4, %v904_v5  ;;  %v1565_v19 = vpack.c.bf16 %v905_v50, %v903_v58 }
 0x633   : > { %v912_v0 = vpop.permute.xlu0 %911 }
 0x634   : > { %v915_v51 = vsel %vm365_vm3, %v908_v62, %v912_v0  ;;  %v917_v59 = vsel %vm365_vm3, %v912_v0, %v908_v62 }
 0x635   : > { %v920_v60 = vmul.f32 %v915_v51, %v1936_v55 }
 0x636   : > { %v914_v1 = vpop.permute.xlu1 %913 }
 0x637   : > { %v924_v2 = vpop.permute.xlu0 %923  ;;  %v916_v46 = vsel %vm365_vm3, %v910_v63, %v914_v1 }
 0x63a   : > { %v926_v3 = vpop.permute.xlu1 %925 }
 0x63b   : > { %v928_v8 = vpop.permute.xlu0 %927 }
 0x63e   : > { %v930_v12 = vpop.permute.xlu1 %929 }
 0x63f   : > { %v2186_v24 = vpop.permute.xlu0 %939  ;;  %v932_v38 = vsel %vm393_vm4, %v926_v3, %v930_v12  ;;  %v934_v37 = vsel %vm393_vm4, %v930_v12, %v926_v3 }
 0x640   : > { %v938_v25 = vmul.f32 %v932_v38, %v1958_v18  ;;  %v937_v30 = vmul.f32 %v934_v37, %v1955_v17 }
 0x642   : > { %v876_v28 = vpop.permute.xlu1 %875 }
 0x643   : > { %v883_v31 = vsel %vm309_vm1, %v876_v28, %v880_v52  ;;  %v885_v34 = vsel %vm309_vm1, %v880_v52, %v876_v28  ;;  %v944_v41 = vpop.permute.xlu0 %943  ;;  %v919_v28 = vmul.f32 %v917_v59, %v1933_v54 }
 0x644   : > { %v887_v6 = vmul.f32 %v885_v34, %v1889_v20  ;;  %v888_v45 = vmul.f32 %v883_v31, %v1892_v21  ;;  %v918_v20 = vsel %vm365_vm3, %v914_v1, %v910_v63  ;;  %v922_v21 = vmul.f32 %v916_v46, %v1936_v55 }
 0x645   : > { %v921_v63 = vmul.f32 %v918_v20, %v1933_v54  ;;  %v931_v1 = vsel %vm393_vm4, %v924_v2, %v928_v8  ;;  %v933_v55 = vsel %vm393_vm4, %v928_v8, %v924_v2 }
 0x646   : > { %v1561_v15 = vpack.c.bf16 %v889_v27, %v887_v6  ;;  %v942_v16 = vpop.permute.xlu1 %941  ;;  %v1559_v49 = vpack.c.bf16 %v890_v29, %v888_v45  ;;  %v1567_v27 = vpack.c.bf16 %v922_v21, %v920_v60  ;;  %v936_v62 = vmul.f32 %v931_v1, %v1958_v18 }
 0x647   : > { %v956_v52 = vpop.permute.xlu0 %955  ;;  %v1569_v29 = vpack.c.bf16 %v921_v63, %v919_v28  ;;  %v935_v3 = vmul.f32 %v933_v55, %v1955_v17  ;;  %v949_v18 = vsel %vm421_vm5, %v944_v41, %v2186_v24  ;;  %v947_v6 = vsel %vm421_vm5, %v2186_v24, %v944_v41  ;;  %v871_v55 = vld [vmem:[%s2348_s2] sm:$0xff] }
 0x648   : > { %1560 = vmatprep.subr.bf16.mxu1 %v1559_v49  ;;  %v1571_v34 = vpack.c.bf16 %v938_v25, %v936_v62  ;;  %v952_v45 = vmul.f32 %v949_v18, %v1982_v40  ;;  %v951_v24 = vmul.f32 %v947_v6, %v1979_v39 }
 0x649   : > { %1562 = vmatpush1.bf16.msra.mxu1 %v1561_v15  ;;  %v1573_v42 = vpack.c.bf16 %v937_v30, %v935_v3 }
 0x64a   : > { %v946_v61 = vpop.permute.xlu1 %945  ;;  %1564 = vmatprep.subr.bf16.mxu1 %v1563_v57 }
 0x64b   : > { %v960_v9 = vpop.permute.xlu0 %959  ;;  %v950_v12 = vsel %vm421_vm5, %v946_v61, %v942_v16  ;;  %v948_v8 = vsel %vm421_vm5, %v942_v16, %v946_v61 }
 0x64c   : > { %v954_v4 = vmul.f32 %v950_v12, %v1982_v40  ;;  %v953_v47 = vmul.f32 %v948_v8, %v1979_v39  ;;  %v965_v5 = vsel %vm449_vm6, %v960_v9, %v956_v52  ;;  %v963_v40 = vsel %vm449_vm6, %v956_v52, %v960_v9 }
 0x64d   : > { %1566 = vmatpush1.bf16.msra.mxu1 %v1565_v19  ;;  %v968_v32 = vmul.f32 %v965_v5, %v2006_v56  ;;  %v967_v52 = vmul.f32 %v963_v40, %v2003_v53 }
 0x64e   : > { %v958_v0 = vpop.permute.xlu1 %957  ;;  %1568 = vmatprep.subr.bf16.mxu1 %v1567_v27  ;;  %v1579_v50 = vpack.c.bf16 %v954_v4, %v952_v45 }
 0x64f   : > { %v972_v31 = vpop.permute.xlu0 %971 }
 0x651   : > { %1570 = vmatpush1.bf16.msra.mxu1 %v1569_v29 }
 0x652   : > { %v962_v54 = vpop.permute.xlu1 %961  ;;  %1572 = vmatprep.subr.bf16.mxu1 %v1571_v34 }
 0x653   : > { %v976_v2 = vpop.permute.xlu0 %975  ;;  %v966_v17 = vsel %vm449_vm6, %v962_v54, %v958_v0  ;;  %v964_v15 = vsel %vm449_vm6, %v958_v0, %v962_v54 }
 0x654   : > { %v970_v16 = vmul.f32 %v966_v17, %v2006_v56  ;;  %v969_v41 = vmul.f32 %v964_v15, %v2003_v53  ;;  %v981_v51 = vsel %vm477_vm7, %v976_v2, %v972_v31  ;;  %v979_v56 = vsel %vm477_vm7, %v972_v31, %v976_v2 }
 0x655   : > { %1574 = vmatpush1.bf16.msra.mxu1 %v1573_v42  ;;  %v984_v20 = vmul.f32 %v981_v51, %v2028_v23  ;;  %v983_v60 = vmul.f32 %v979_v56, %v2025_v22 }
 0x656   : > { %v974_v46 = vpop.permute.xlu1 %973  ;;  %1576 = vmatprep.subr.bf16.mxu1 %v1575_v36  ;;  %v1581_v36 = vpack.c.bf16 %v953_v47, %v951_v24  ;;  %v1585_v58 = vpack.c.bf16 %v969_v41, %v967_v52 }
 0x657   : > { %v988_v49 = vpop.permute.xlu0 %987 }
 0x659   : > { %1578 = vmatpush1.bf16.msra.mxu1 %v1577_v48  ;;  %v1583_v48 = vpack.c.bf16 %v970_v16, %v968_v32 }
 0x65a   : > { %v978_v35 = vpop.permute.xlu1 %977  ;;  %1580 = vmatprep.subr.bf16.mxu1 %v1579_v50 }
 0x65b   : > { %v982_v39 = vsel %vm477_vm7, %v978_v35, %v974_v46  ;;  %v980_v7 = vsel %vm477_vm7, %v974_v46, %v978_v35  ;;  %v992_v21 = vpop.permute.xlu0 %991 }
 0x65c   : > { %v986_v33 = vmul.f32 %v982_v39, %v2028_v23  ;;  %v985_v38 = vmul.f32 %v980_v7, %v2025_v22  ;;  %v995_v61 = vsel %vm505_vm8, %v988_v49, %v992_v21  ;;  %v997_v53 = vsel %vm505_vm8, %v992_v21, %v988_v49 }
 0x65d   : > { %1582 = vmatpush1.bf16.msra.mxu1 %v1581_v36  ;;  %v999_v9 = vmul.f32 %v995_v61, %v2047_v43  ;;  %v1000_v22 = vmul.f32 %v997_v53, %v2050_v44 }
 0x65e   : > { %v990_v57 = vpop.permute.xlu1 %989  ;;  %1584 = vmatprep.subr.bf16.mxu1 %v1583_v48  ;;  %v1587_v59 = vpack.c.bf16 %v986_v33, %v984_v20  ;;  %v1589_v63 = vpack.c.bf16 %v985_v38, %v983_v60 }
 0x661   : > { %1586 = vmatpush1.bf16.msra.mxu1 %v1585_v58 }
 0x662   : > { %v994_v19 = vpop.permute.xlu1 %993  ;;  %1588 = vmatprep.subr.bf16.mxu1 %v1587_v59 }
 0x663   : > { %v996_v23 = vsel %vm505_vm8, %v990_v57, %v994_v19  ;;  %v998_v1 = vsel %vm505_vm8, %v994_v19, %v990_v57 }
 0x664   : > { %v1001_v37 = vmul.f32 %v996_v23, %v2047_v43  ;;  %v1002_v25 = vmul.f32 %v998_v1, %v2050_v44  ;;  %v873_v43 = vld [vmem:[%s2348_s2 + $0x10] sm:$0xff] }
 0x665   : > { %1590 = vmatpush1.bf16.msra.mxu1 %v1589_v63 }
 0x666   : > { %v1593_v27 = vpack.c.bf16 %v1001_v37, %v999_v9  ;;  %v1591_v28 = vpack.c.bf16 %v1002_v25, %v1000_v22  ;;  %v1700_v22 = vmov 5   ;;  %v1658_v37 = vld [vmem:[%s2349_s3] sm:$0xff]  ;;  %v1659_v25 = vld [vmem:[%s2349_s3 + $0x8] sm:$0xff] }
 0x668   : > { %1592 = vmatprep.subr.bf16.mxu1 %v1591_v28 }
 0x669   : > { %1594 = vmatpush1.bf16.msra.mxu1 %v1593_v27 }
 0x66c   : > { %1082 = vmatmul.mubr.f32.vlgmr.msra.gmra.mrb[4].mxu1 %v871_v55  ;;  %v1005_v44 = vpop.permute.xlu0 %1004 }
 0x66d   : > { %1459 = vmatprep.mubr.msk.f32.mxu1 %vm537_vm0, %v874_v14 }
 0x670   : > { %1088 = vmatmul.mubr.f32.gmra.mrb[6].mxu1 %v873_v43 }
 0x673   : > { %v1009_v31 = vpop.permute.xlu1 %1008 }
 0x73f   : > { %v1083_v62 = vpop.f32.mrb[4].mxu1 }
 0x740   : > { %v1084_v0 = vadd.f32 %v1083_v62, %v1005_v44  ;;  %v1085_v29 = vpop.f32.mrb[5].mxu1 }
 0x741   : > { %v1086_v30 = vadd.f32 %v1085_v29, %v1005_v44 }
 0x743   : > { %v1089_v34 = vpop.f32.mrb[6].mxu1  ;;  %v1094_v3 = vadd.f32 %v1086_v30, %v1084_v0 }
 0x744   : > { %v1090_v12 = vadd.f32 %v1089_v34, %v1009_v31  ;;  %v1091_v54 = vpop.f32.mrb[7].mxu1 }
 0x745   : > { %v1092_v42 = vadd.f32 %v1091_v54, %v1009_v31  ;;  %1095 = vadd.xlane.f32.xlu1 %v1094_v3 }
 0x747   : > { %v1097_v18 = vadd.f32 %v1092_v42, %v1090_v12 }
 0x749   : > { %1098 = vadd.xlane.f32.xlu0 %v1097_v18 }
 0x7d2   : > { %v1096_v2 = vpop.xlane.xlu1 %1095 }
 0x7d6   : > { %v1099_v8 = vpop.xlane.xlu0 %1098 }
 0x7d7   : > { %v1595_v4 = vpack.c.bf16 %v1099_v8, %v1096_v2 }
 0x7d9   : > { %1596 = vmatprep.subr.bf16.mxu0 %v1595_v4 }
 0x7da   : > { %1598 = vmatpush3.bf16.msra.mxu0 %v1595_v4 }
 0x7dd   : > { %1506 = vmatmul.mubr.msk.f32.vlgmr.msra.gmra.mrb[4].mxu0 %vm537_vm0, %v2086_v26 }
 0x7de   : > { %1512 = vmatprep.mubr.msk.f32.mxu0 %vm537_vm0, %v2077_v13 }
 0x8b0   : > { %v1507_v17 = vpop.f32.mrb[4].mxu0 }
 0x8b1   : > { %v1176_v6 = vmul.f32 0.00390625, %v1507_v17  ;;  %v1166_v45 = vpop.f32.mrb[5].mxu0  ;;  %v1662_v17 = vld [vmem:[%s1782_s15 + $0x10] sm:$0xff] }
 0x8b2   : > { %v1175_v46 = vmul.f32 0.00390625, %v1166_v45  ;;  %v1663_v45 = vld [vmem:[%s1782_s15 + $0x18] sm:$0xff] }
 0x8b3   : > { %1184 = vperm.xlu1 %1647, %v1176_v6  }
 0x8b4   : > { %1179 = vperm.xlu0 %1646, %v1175_v46  }
 0x932   : > { %v1185_v47 = vpop.permute.xlu1 %1184 }
 0x933   : > { %v2304_v5 = vsub.f32 %v1090_v12, %v1185_v47  ;;  %v2306_v15 = vsub.f32 %v1092_v42, %v1185_v47  ;;  %v1180_v16 = vpop.permute.xlu0 %1179 }
 0x934   : > { %v1187_v49 = vsub.f32 %v1084_v0, %v1180_v16  ;;  %v1188_v50 = vsub.f32 %v1086_v30, %v1180_v16  ;;  %v1660_v0 = vld [vmem:[%s1782_s15] sm:$0xff]  ;;  %v1661_v30 = vld [vmem:[%s1782_s15 + $0x8] sm:$0xff] }
 0x935   : > { %v1193_v24 = vmul.f32 %v2304_v5, %v2304_v5  ;;  %v1194_v13 = vmul.f32 %v2306_v15, %v2306_v15 }
 0x936   : > { %v1191_v40 = vmul.f32 %v1187_v49, %v1187_v49  ;;  %v1192_v32 = vmul.f32 %v1188_v50, %v1188_v50 }
 0x937   : > { %v1198_v35 = vadd.f32 %v1194_v13, %v1193_v24 }
 0x938   : > { %v1195_v36 = vadd.f32 %v1192_v32, %v1191_v40 }
 0x939   : > { %1199 = vadd.xlane.f32.xlu0 %v1198_v35 }
 0x93a   : > { %1196 = vadd.xlane.f32.xlu1 %v1195_v36 }
 0x94b   : > { %1292 = vrot.lane.b32.xlu1 %v1868_v10, %s1699_s27 }
 0x94f   : > { %1294 = vrot.lane.b32.xlu1 %v1874_v11, %s1699_s27 }
 0x9c6   : > { %v1200_v41 = vpop.xlane.xlu0 %1199 }
 0x9c7   : > { %v1197_v51 = vpop.xlane.xlu1 %1196 }
 0x9c8   : > { %v1599_v39 = vpack.c.bf16 %v1200_v41, %v1197_v51 }
 0x9ca   : > { %1600 = vmatprep.subr.bf16.mxu0 %v1599_v39 }
 0x9cb   : > { %1602 = vmatpush3.bf16.msra.mxu0 %v1599_v39  ;;  %v1293_v11 = vpop.permute.xlu1 %1292 }
 0x9ce   : > { %1513 = vmatmul.mubr.msk.f32.vlgmr.msra.gmra.mrb[6].mxu0 %vm537_vm0, %v2086_v26 }
 0x9cf   : > { %v1295_v26 = vpop.permute.xlu1 %1294 }
 0xaa1   : > { %v1514_v7 = vpop.f32.mrb[6].mxu0 }
 0xaa2   : > { %v1277_v33 = vmul.f32 0.00390625, %v1514_v7  ;;  %v1267_v48 = vpop.f32.mrb[7].mxu0 }
 0xaa3   : > { %v1276_v52 = vmul.f32 0.00390625, %v1267_v48 }
 0xaa4   : > { %v1279_v56 = vadd.f32 1e-05, %v1277_v33 }
 0xaa5   : > { %v1278_v20 = vadd.f32 1e-05, %v1276_v52 }
 0xaa6   : > { %1654 = vrsqrt.f32 %v1279_v56  ;;  %v1283_v21 = vmul.f32 0.5, %v1279_v56 }
 0xaa7   : > { %1656 = vrsqrt.f32 %v1278_v20  ;;  %v1282_v57 = vmul.f32 0.5, %v1278_v20 }
 0xab0   : > { %v1655_v10 = vpop.eup %1654 }
 0xab1   : > { %v1657_v58 = vpop.eup %1656  ;;  %v1285_v38 = vmul.f32 %v1655_v10, %v1283_v21 }
 0xab2   : > { %v1284_v59 = vmul.f32 %v1657_v58, %v1282_v57 }
 0xab3   : > { %v1287_v60 = vmul.f32 %v1655_v10, %v1285_v38 }
 0xab4   : > { %v1286_v61 = vmul.f32 %v1657_v58, %v1284_v59 }
 0xab5   : > { %v1289_v53 = vsub.f32 1.5, %v1287_v60 }
 0xab6   : > { %v1288_v19 = vsub.f32 1.5, %v1286_v61 }
 0xab7   : > { %v1291_v63 = vmul.f32 %v1655_v10, %v1289_v53 }
 0xab8   : > { %v1290_v23 = vmul.f32 %v1657_v58, %v1288_v19 }
 0xab9   : > { %v1299_v1 = vmul.f32 %v1295_v26, %v1291_v63 }
 0xaba   : > { %v1298_v9 = vmul.f32 %v1293_v11, %v1290_v23 }
 0xabb   : > { %1307 = vperm.xlu1 %1647, %v1299_v1  }
 0xabc   : > { %1302 = vperm.xlu0 %1646, %v1298_v9  }
 0xabf   : > { %1648 = vset.pattern.permute.xlu1 %v1700_v22 }
 0xac0   : > { %1315 = vperm.xlu1 %1648, %v1658_v37   ;;  %1649 = vset.pattern.permute.xlu0 %v1700_v22 }
 0xac4   : > { %1319 = vperm.xlu1 %1648, %v1659_v25  }
 0xb3a   : > { %v1308_v27 = vpop.permute.xlu1 %1307 }
 0xb3b   : > { %v1303_v28 = vpop.permute.xlu0 %1302  ;;  %v1312_v34 = vmul.f32 %v1308_v27, %v2304_v5  ;;  %v1313_v3 = vmul.f32 %v1308_v27, %v2306_v15 }
 0xb3c   : > { %v1310_v55 = vmul.f32 %v1303_v28, %v1187_v49  ;;  %v1311_v14 = vmul.f32 %v1303_v28, %v1188_v50 }
 0xb3f   : > { %v1316_v43 = vpop.permute.xlu1 %1315 }
 0xb40   : > { %v1322_v44 = vadd.f32 %v1316_v43, %v1310_v55  ;;  %v1323_v62 = vadd.f32 %v1316_v43, %v1311_v14 }
 0xb42   : > { %v1326_v29 = vadd.f32 %v1660_v0, %v1322_v44  ;;  %v1327_v31 = vadd.f32 %v1661_v30, %v1323_v62 }
 0xb43   : > { %v1320_v12 = vpop.permute.xlu1 %1319 }
 0xb44   : > { %vm1330_vm13 = vcmp.gt.f32.partialorder %v1326_v29, 0.0  ;;  %vm1331_vm14 = vcmp.gt.f32.partialorder %v1327_v31, 0.0  ;;  %v1334_v54 = vmul.f32 0.01, %v1326_v29  ;;  %v1335_v42 = vmul.f32 0.01, %v1327_v31 }
 0xb45   : > { %v1324_v18 = vadd.f32 %v1320_v12, %v1312_v34  ;;  %v1325_v2 = vadd.f32 %v1320_v12, %v1313_v3 }
 0xb46   : > { %v1338_v8 = vsel %vm1330_vm13, %v1326_v29, %v1334_v54  ;;  %v1339_v4 = vsel %vm1331_vm14, %v1327_v31, %v1335_v42  ;;  %1352 = sbr.rel (!%p1766_p5) target bundleno = 2901 (0xb55), region = 71 }
 0xb47   : > { %1342 = vst [vmem:[%s271_s11] sm:$0xff] %v1338_v8  ;;  %1343 = vst [vmem:[%s271_s11 + $0x8] sm:$0xff] %v1339_v4  ;;  %v1328_v6 = vadd.f32 %v1662_v17, %v1324_v18  ;;  %v1329_v46 = vadd.f32 %v1663_v45, %v1325_v2 }
 0xb49   : > { %vm1332_vm15 = vcmp.gt.f32.partialorder %v1328_v6, 0.0  ;;  %vm1333_vm0 = vcmp.gt.f32.partialorder %v1329_v46, 0.0  ;;  %v1336_v47 = vmul.f32 0.01, %v1328_v6  ;;  %v1337_v5 = vmul.f32 0.01, %v1329_v46 }
 0xb4b   : > { %v1340_v15 = vsel %vm1332_vm15, %v1328_v6, %v1336_v47  ;;  %v1341_v16 = vsel %vm1333_vm0, %v1329_v46, %v1337_v5 }
 0xb4c   : > { %1344 = vst [vmem:[%s271_s11 + $0x10] sm:$0xff] %v1340_v15  ;;  %1345 = vst [vmem:[%s271_s11 + $0x18] sm:$0xff] %v1341_v16 }
 0xb4e   : > { %v1368_v49 = vld [vmem:[%s271_s11] sm:$0xff]  ;;  %v1370_v50 = vld [vmem:[%s271_s11 + $0x8] sm:$0xff] }
 0xb4f   : > { %1369 = vst [vmem:[%s1355_s13] sm:$0xff] %v1368_v49  ;;  %1371 = vst [vmem:[%s1355_s13 + $0x8] sm:$0xff] %v1370_v50 }
 0xb53   : > { %v1372_v24 = vld [vmem:[%s271_s11 + $0x10] sm:$0xff]  ;;  %v1374_v13 = vld [vmem:[%s271_s11 + $0x18] sm:$0xff] }
 0xb54   : > { %1373 = vst [vmem:[%s1355_s13 + $0x20] sm:$0xff] %v1372_v24  ;;  %1375 = vst [vmem:[%s1355_s13 + $0x28] sm:$0xff] %v1374_v13 }
 0xb55 PF: > { %p13_p10 = scmp.ge.s32.totalorder %s1753_s25, 4   ;;  %s2354_s21 = smov %s1682_s22 }
 0xb56   : > { %s2355_s22 = smov %s1764_s28  ;;  %s2356_s23 = smov %s1753_s25 }
 0xb57   :  { %15 = sbr.rel (!%p13_p10) target bundleno = 2 (0x2), region = 132 }

</bundles_post_ra>
